<compile_context>
chip_gen: v6e
topology: v6e:2x2x1
jax: 0.10.0
libtpu: 0.0.40
codegen_flags: <defaults>
</compile_context>

<pallas_src>
import math
import functools

import jax
import jax.numpy as jnp
from jax import lax
from jax.experimental import pallas as pl
from jax.experimental.pallas import tpu as pltpu  # noqa: F401  (TPU backend)

# ---------------- model config (small, consistent with the module) ------------
S = 8            # sequence length
B = 8            # batch (== S because of the src_mask(src.shape[1]) quirk)
E = 32           # d_model
H = 4            # nhead
D = E // H       # head dim
F = 64           # dim_feedforward
EPS = 1e-5       # layer_norm_eps
VROW = 128       # lane width of the packed bias/LayerNorm slab (one (8,128) tile)


def _encoder_layer_kernel(x_ref, w_ref, v_ref, o_ref,
                          *, seq, batch, e, h, d, f, eps):
    """Full post-norm TransformerEncoderLayer forward over ALL tokens in one step.

    x_ref : (S*B, E)   rows ordered (s, b)  (row i -> s = i // B, b = i % B)
    w_ref : (E, 3E+F+E+F) packed [Wqkv | W1 | Wout | W2ᵀ]
    v_ref : (8, VROW)  packed bias / LayerNorm vectors, one per sublane row
    o_ref : (S*B, E)
    """
    sb = seq * batch          # tokens
    hb = h * sb               # head-packed key axis
    log2_sb = sb.bit_length() - 1
    log2_d = d.bit_length() - 1

    x = x_ref[...].astype(jnp.float32)                          # (S*B, E)

    # ----- packed parameters: static lane / sublane slices of the two slabs -----
    vec = v_ref[...].astype(jnp.float32)                        # (8, VROW)
    b_qkv = vec[0:1, 0:3 * e]
    b1    = vec[1:2, 0:f]
    b_out = vec[2:3, 0:e]
    b2    = vec[3:4, 0:e]
    g1    = vec[4:5, 0:e]
    be1   = vec[5:6, 0:e]
    g2    = vec[6:7, 0:e]
    be2   = vec[7:8, 0:e]

    w_qkv = w_ref[:, 0:3 * e]                                   # (E, 3E)
    w1    = w_ref[:, 3 * e:3 * e + f]                           # (E, F)
    w_out = w_ref[:, 3 * e + f:4 * e + f]                       # (E, E)
    w2t   = w_ref[:, 4 * e + f:4 * e + 2 * f]                   # (E, F) == W2ᵀ

    # ----- fused QKV projection: one (S*B, E) x (E, 3E) MXU pass -----
    qkv = jnp.dot(x, w_qkv, preferred_element_type=jnp.float32) + b_qkv
    q = qkv[:, 0 * e:1 * e] * (1.0 / math.sqrt(d))
    k = qkv[:, 1 * e:2 * e]
    v = qkv[:, 2 * e:3 * e]

    # ----- block-diagonal head packing (all heads live in lanes; no stack, no 3-D dots) --
    # M[r, c] = 1  iff  row-block (r // S*B) == lane head (c // D)
    r_i = lax.broadcasted_iota(jnp.int32, (hb, e), 0)
    c_i = lax.broadcasted_iota(jnp.int32, (hb, e), 1)
    blkf = (jnp.right_shift(r_i, log2_sb) ==
            jnp.right_shift(c_i, log2_d)).astype(jnp.float32)   # (H*S*B, E)

    k_bd = jnp.concatenate([k] * h, axis=0) * blkf              # (H*S*B, E) block-diag K~
    v_bd = jnp.concatenate([v] * h, axis=0) * blkf              # (H*S*B, E) block-diag V~

    # scores[i, h*SB + j] = q_h[i] · k_h[j]   — ONE A·Bᵀ MXU pass, 256-lane-dense output
    scores = lax.dot_general(q, k_bd, (((1,), (1,)), ((), ())),
                             preferred_element_type=jnp.float32)  # (S*B, H*S*B)

    # ----- validity mask, generated in-kernel, kept boolean (no additive -1e30 mask) -----
    # valid(i, j): same batch element (i % B == j % B) and i != j  — identical per head.
    row = lax.broadcasted_iota(jnp.int32, (sb, hb), 0)
    col = lax.broadcasted_iota(jnp.int32, (sb, hb), 1)
    j = jnp.bitwise_and(col, sb - 1)                             # key token index (sb pow2)
    same_batch = jnp.bitwise_and(row - j, batch - 1) == 0        # batch is a power of two
    valid = jnp.logical_and(same_batch, row != j)

    # ----- masked softmax -----
    # Row max over valid entries across all heads (softmax is shift-invariant; safe here
    # since cross-head score spreads are far below the f32 exp underflow range).
    m = jnp.max(jnp.where(valid, scores, jnp.float32(-1e30)), axis=-1, keepdims=True)
    p = jnp.where(valid, jnp.exp(scores - m), jnp.float32(0.0))  # (S*B, H*S*B)

    # Per-head denominators, broadcast straight into each head's D lanes, and context —
    # two (64,256)x(256,32) passes with full 256-deep contractions.
    denom = jnp.dot(p, blkf, preferred_element_type=jnp.float32)   # (S*B, E)
    ctx_u = jnp.dot(p, v_bd, preferred_element_type=jnp.float32)   # (S*B, E) == concat(heads)
    # approx reciprocal uses the otherwise-idle EUP slot; switch to exact division if
    # bit-level parity with a framework reference is required.
    ctx = ctx_u * pl.reciprocal(denom, approx=True)

    # ----- output projection: ONE plain 2-D matmul (ctx already lane-contiguous) -----
    attn = jnp.dot(ctx, w_out, preferred_element_type=jnp.float32) + b_out

    # ----- residual + LayerNorm 1 (post-norm) -----
    y = x + attn
    mu = jnp.mean(y, axis=-1, keepdims=True)
    var = jnp.mean((y - mu) ** 2, axis=-1, keepdims=True)
    y = (y - mu) * lax.rsqrt(var + eps) * g1 + be1

    # ----- feed-forward (ReLU) -----
    h1 = jnp.dot(y, w1, preferred_element_type=jnp.float32) + b1
    h1 = jnp.maximum(h1, 0.0)
    # W2 stored transposed in the slab (keeps every matrix at E=32 rows -> one slab);
    # contract the lane dims of both operands (same A·Bᵀ form as the score pass).
    h2 = lax.dot_general(h1, w2t, (((1,), (1,)), ((), ())),
                         preferred_element_type=jnp.float32) + b2

    # ----- residual + LayerNorm 2 -----
    z = y + h2
    mu2 = jnp.mean(z, axis=-1, keepdims=True)
    var2 = jnp.mean((z - mu2) ** 2, axis=-1, keepdims=True)
    z = (z - mu2) * lax.rsqrt(var2 + eps) * g2 + be2

    o_ref[...] = z.astype(o_ref.dtype)


@jax.jit
def masked_transformer_encoder_layer(src, w_slab, v_slab):
    """src: (S, B, E) float32 (PyTorch batch_first=False layout). Params pre-packed."""
    s, b, e = src.shape
    assert b > 0 and (b & (b - 1)) == 0, "in-kernel mask assumes power-of-two batch"
    assert s > 0 and (s & (s - 1)) == 0, "in-kernel mask assumes power-of-two seq"
    assert e % H == 0
    d = e // H
    assert (d & (d - 1)) == 0, "head-packing shifts assume power-of-two head dim"
    f = (w_slab.shape[1] - 4 * e) // 2      # slab lanes = 3E + F + E + F

    x2d = src.reshape(s * b, e)             # free: (S,B,E) row-major == (S*B, E)

    kernel = functools.partial(_encoder_layer_kernel,
                               seq=s, batch=b, e=e, h=H, d=d, f=f, eps=EPS)

    out = pl.pallas_call(
        kernel,
        out_shape=jax.ShapeDtypeStruct((s * b, e), src.dtype),
        # no grid / BlockSpecs: single step, every operand loaded whole into VMEM
        # (3 input DMAs + 1 output DMA total).
    )(x2d, w_slab, v_slab)

    return out.reshape(s, b, e)             # free reshape back to (S, B, E)


def pack_params(params):
    """One-time weight-layout prep: 12 tensors -> 2 DMA-friendly slabs (done outside jit)."""
    w_slab = jnp.concatenate(
        [params["w_qkv"],            # (E, 3E)   lanes [0, 3E)
         params["w1"],               # (E, F)    lanes [3E, 3E+F)
         params["w_out"],            # (E, E)    lanes [3E+F, 4E+F)
         params["w2"].T],            # (E, F)    lanes [4E+F, 4E+2F)   (W2 transposed)
        axis=1).astype(jnp.float32)                               # (32, 256)

    def _row(name):
        v = jnp.reshape(params[name], (1, -1)).astype(jnp.float32)
        assert v.shape[1] <= VROW
        return jnp.pad(v, ((0, 0), (0, VROW - v.shape[1])))

    v_slab = jnp.concatenate(
        [_row("b_qkv"), _row("b1"), _row("b_out"), _row("b2"),
         _row("ln1_g"), _row("ln1_b"), _row("ln2_g"), _row("ln2_b")],
        axis=0)                                                   # (8, 128)
    return w_slab, v_slab


def init_params(key):
    ks = jax.random.split(key, 8)
    sc_in = 1.0 / math.sqrt(E)
    sc_ff = 1.0 / math.sqrt(F)
    return {
        "w_qkv": jax.random.uniform(ks[0], (E, 3 * E), jnp.float32, -sc_in, sc_in),
        "b_qkv": jax.random.uniform(ks[1], (1, 3 * E), jnp.float32, -sc_in, sc_in),
        "w_out": jax.random.uniform(ks[2], (E, E), jnp.float32, -sc_in, sc_in),
        "b_out": jax.random.uniform(ks[3], (1, E), jnp.float32, -sc_in, sc_in),
        "ln1_g": jnp.ones((1, E), jnp.float32),
        "ln1_b": jnp.zeros((1, E), jnp.float32),
        "w1":    jax.random.uniform(ks[4], (E, F), jnp.float32, -sc_in, sc_in),
        "b1":    jax.random.uniform(ks[5], (1, F), jnp.float32, -sc_in, sc_in),
        "w2":    jax.random.uniform(ks[6], (F, E), jnp.float32, -sc_ff, sc_ff),
        "b2":    jax.random.uniform(ks[7], (1, E), jnp.float32, -sc_ff, sc_ff),
        "ln2_g": jnp.ones((1, E), jnp.float32),
        "ln2_b": jnp.zeros((1, E), jnp.float32),
    }


def _reference(src, params):
    """Pure-JAX forward (PyTorch module with p=0 mask, eval-mode dropout)."""
    s, b, e = src.shape
    h, d = H, e // H
    x = src.reshape(s * b, e)
    qkv = x @ params["w_qkv"] + params["b_qkv"]
    q = qkv[:, :e] / math.sqrt(d)
    k = qkv[:, e:2 * e]
    v = qkv[:, 2 * e:]
    idx = jnp.arange(s * b)
    valid = ((idx[:, None] % b) == (idx[None, :] % b)) & (idx[:, None] != idx[None, :])
    ctx = jnp.zeros((s * b, e), jnp.float32)
    for hh in range(h):
        sl = slice(hh * d, (hh + 1) * d)
        sc = q[:, sl] @ k[:, sl].T
        sc = jnp.where(valid, sc, -jnp.inf)
        p = jax.nn.softmax(sc, axis=-1)
        ctx = ctx.at[:, sl].set(p @ v[:, sl])

    def ln(u, g, bb):
        mu = jnp.mean(u, -1, keepdims=True)
        var = jnp.mean((u - mu) ** 2, -1, keepdims=True)
        return (u - mu) * lax.rsqrt(var + EPS) * g + bb

    y = ln(x + ctx @ params["w_out"] + params["b_out"], params["ln1_g"], params["ln1_b"])
    h1 = jnp.maximum(y @ params["w1"] + params["b1"], 0.0)
    z = ln(y + h1 @ params["w2"] + params["b2"], params["ln2_g"], params["ln2_b"])
    return z.reshape(s, b, e)


if __name__ == "__main__":
    key = jax.random.PRNGKey(0)
    k_x, k_p = jax.random.split(key)

    # src in PyTorch batch_first=False layout: (S, B, E); S == B by module quirk.
    src = jax.random.normal(k_x, (S, B, E), dtype=jnp.float32)
    params = init_params(k_p)
    w_slab, v_slab = pack_params(params)      # one-time layout prep (2 slabs, 3 DMAs/call)

    out = masked_transformer_encoder_layer(src, w_slab, v_slab)
    out = jax.block_until_ready(out)

    assert out.shape == src.shape
    assert bool(jnp.all(jnp.isfinite(out)))

    # loose parity check vs pure-JAX reference (tolerance >> approx-reciprocal error,
    # << any structural bug)
    ref = _reference(src, params)
    err = float(jnp.max(jnp.abs(out - ref)))
    assert err < 3e-2, f"mismatch vs reference: max abs err = {err}"

    print("KERNEL_OK")
</pallas_src>

<mosaic_0001>
module attributes {stable_mosaic.version = 11 : i64} {
  func.func @_encoder_layer_kernel(%arg0: memref<64x32xf32, #tpu.memory_space<vmem>>, %arg1: memref<32x256xf32, #tpu.memory_space<vmem>>, %arg2: memref<8x128xf32, #tpu.memory_space<vmem>>, %arg3: memref<64x32xf32, #tpu.memory_space<vmem>>) attributes {dimension_semantics = [], scalar_prefetch = 0 : i64, scratch_operands = 0 : i64, tpu.core_type = #tpu.core_type<tc>} {
    %c0 = arith.constant 0 : index
    %c0_0 = arith.constant 0 : index
    %0 = vector.load %arg0[%c0, %c0_0] : memref<64x32xf32, #tpu.memory_space<vmem>>, vector<64x32xf32>
    %c0_1 = arith.constant 0 : index
    %c0_2 = arith.constant 0 : index
    %1 = vector.load %arg2[%c0_1, %c0_2] : memref<8x128xf32, #tpu.memory_space<vmem>>, vector<8x128xf32>
    %2 = vector.extract_strided_slice %1 {offsets = [0, 0], sizes = [1, 96], strides = [1, 1]} : vector<8x128xf32> to vector<1x96xf32>
    %3 = vector.extract_strided_slice %1 {offsets = [1, 0], sizes = [1, 64], strides = [1, 1]} : vector<8x128xf32> to vector<1x64xf32>
    %4 = vector.extract_strided_slice %1 {offsets = [2, 0], sizes = [1, 32], strides = [1, 1]} : vector<8x128xf32> to vector<1x32xf32>
    %5 = vector.extract_strided_slice %1 {offsets = [3, 0], sizes = [1, 32], strides = [1, 1]} : vector<8x128xf32> to vector<1x32xf32>
    %6 = vector.extract_strided_slice %1 {offsets = [4, 0], sizes = [1, 32], strides = [1, 1]} : vector<8x128xf32> to vector<1x32xf32>
    %7 = vector.extract_strided_slice %1 {offsets = [5, 0], sizes = [1, 32], strides = [1, 1]} : vector<8x128xf32> to vector<1x32xf32>
    %8 = vector.extract_strided_slice %1 {offsets = [6, 0], sizes = [1, 32], strides = [1, 1]} : vector<8x128xf32> to vector<1x32xf32>
    %9 = vector.extract_strided_slice %1 {offsets = [7, 0], sizes = [1, 32], strides = [1, 1]} : vector<8x128xf32> to vector<1x32xf32>
    %c0_3 = arith.constant 0 : index
    %c0_4 = arith.constant 0 : index
    %10 = vector.load %arg1[%c0_3, %c0_4] : memref<32x256xf32, #tpu.memory_space<vmem>>, vector<32x96xf32>
    %c0_5 = arith.constant 0 : index
    %c96 = arith.constant 96 : index
    %11 = vector.load %arg1[%c0_5, %c96] : memref<32x256xf32, #tpu.memory_space<vmem>>, vector<32x64xf32>
    %c0_6 = arith.constant 0 : index
    %c160 = arith.constant 160 : index
    %12 = vector.load %arg1[%c0_6, %c160] : memref<32x256xf32, #tpu.memory_space<vmem>>, vector<32x32xf32>
    %c0_7 = arith.constant 0 : index
    %c192 = arith.constant 192 : index
    %13 = vector.load %arg1[%c0_7, %c192] : memref<32x256xf32, #tpu.memory_space<vmem>>, vector<32x64xf32>
    %cst = arith.constant dense<0.000000e+00> : vector<64x96xf32>
    %14 = tpu.matmul %0, %10, %cst {dimension_numbers = #tpu.dot_dimension_numbers<[1], [0], [0], [1], [0, 0, 1, 1], [], []>} : vector<64x32xf32>, vector<32x96xf32>, vector<64x96xf32> -> vector<64x96xf32>
    %15 = vector.broadcast %2 : vector<1x96xf32> to vector<64x96xf32>
    %16 = arith.addf %14, %15 : vector<64x96xf32>
    %17 = vector.extract_strided_slice %16 {offsets = [0, 0], sizes = [64, 32], strides = [1, 1]} : vector<64x96xf32> to vector<64x32xf32>
    %cst_8 = arith.constant 0.353553385 : f32
    %18 = vector.broadcast %cst_8 : f32 to vector<64x32xf32>
    %19 = arith.mulf %17, %18 : vector<64x32xf32>
    %20 = vector.extract_strided_slice %16 {offsets = [0, 32], sizes = [64, 32], strides = [1, 1]} : vector<64x96xf32> to vector<64x32xf32>
    %21 = vector.extract_strided_slice %16 {offsets = [0, 64], sizes = [64, 32], strides = [1, 1]} : vector<64x96xf32> to vector<64x32xf32>
    %22 = tpu.iota {dimensions = array<i32: 0>} : vector<256x32xi32>
    %23 = tpu.iota {dimensions = array<i32: 1>} : vector<256x32xi32>
    %c6_i32 = arith.constant 6 : i32
    %24 = vector.broadcast %c6_i32 : i32 to vector<256x32xi32>
    %25 = arith.shrsi %22, %24 : vector<256x32xi32>
    %c3_i32 = arith.constant 3 : i32
    %26 = vector.broadcast %c3_i32 : i32 to vector<256x32xi32>
    %27 = arith.shrsi %23, %26 : vector<256x32xi32>
    %28 = arith.cmpi eq, %25, %27 : vector<256x32xi32>
    %29 = arith.extui %28 : vector<256x32xi1> to vector<256x32xi32>
    %30 = arith.sitofp %29 : vector<256x32xi32> to vector<256x32xf32>
    %31 = tpu.concatenate %20, %20, %20, %20 in 0 : vector<64x32xf32>, vector<64x32xf32>, vector<64x32xf32>, vector<64x32xf32> -> vector<256x32xf32>
    %32 = arith.mulf %31, %30 : vector<256x32xf32>
    %33 = tpu.concatenate %21, %21, %21, %21 in 0 : vector<64x32xf32>, vector<64x32xf32>, vector<64x32xf32>, vector<64x32xf32> -> vector<256x32xf32>
    %34 = arith.mulf %33, %30 : vector<256x32xf32>
    %cst_9 = arith.constant dense<0.000000e+00> : vector<64x256xf32>
    %35 = tpu.matmul %19, %32, %cst_9 {dimension_numbers = #tpu.dot_dimension_numbers<[1], [1], [0], [0], [0, 0, 1, 0], [], []>} : vector<64x32xf32>, vector<256x32xf32>, vector<64x256xf32> -> vector<64x256xf32>
    %36 = tpu.iota {dimensions = array<i32: 0>} : vector<64x256xi32>
    %37 = tpu.iota {dimensions = array<i32: 1>} : vector<64x256xi32>
    %c63_i32 = arith.constant 63 : i32
    %38 = vector.broadcast %c63_i32 : i32 to vector<64x256xi32>
    %39 = arith.andi %37, %38 : vector<64x256xi32>
    %40 = arith.subi %36, %39 : vector<64x256xi32>
    %c7_i32 = arith.constant 7 : i32
    %41 = vector.broadcast %c7_i32 : i32 to vector<64x256xi32>
    %42 = arith.andi %40, %41 : vector<64x256xi32>
    %c0_i32 = arith.constant 0 : i32
    %43 = vector.broadcast %c0_i32 : i32 to vector<64x256xi32>
    %44 = arith.cmpi eq, %42, %43 : vector<64x256xi32>
    %45 = arith.cmpi ne, %36, %39 : vector<64x256xi32>
    %46 = arith.andi %44, %45 : vector<64x256xi1>
    %cst_10 = arith.constant -1.000000e+30 : f32
    %47 = vector.broadcast %cst_10 : f32 to vector<64x256xf32>
    %48 = arith.select %46, %35, %47 : vector<64x256xi1>, vector<64x256xf32>
    %cst_11 = arith.constant dense<0xFF800000> : vector<64xf32>
    %49 = vector.multi_reduction <maximumf>, %48, %cst_11 [1] : vector<64x256xf32> to vector<64xf32>
    %50 = vector.shape_cast %49 : vector<64xf32> to vector<64x1xf32>
    %51 = vector.broadcast %50 : vector<64x1xf32> to vector<64x256xf32>
    %52 = arith.subf %35, %51 : vector<64x256xf32>
    %53 = math.exp %52 : vector<64x256xf32>
    %cst_12 = arith.constant 0.000000e+00 : f32
    %54 = vector.broadcast %cst_12 : f32 to vector<64x256xf32>
    %55 = arith.select %46, %53, %54 : vector<64x256xi1>, vector<64x256xf32>
    %cst_13 = arith.constant dense<0.000000e+00> : vector<64x32xf32>
    %56 = tpu.matmul %55, %30, %cst_13 {dimension_numbers = #tpu.dot_dimension_numbers<[1], [0], [0], [1], [0, 0, 1, 1], [], []>} : vector<64x256xf32>, vector<256x32xf32>, vector<64x32xf32> -> vector<64x32xf32>
    %cst_14 = arith.constant dense<0.000000e+00> : vector<64x32xf32>
    %57 = tpu.matmul %55, %34, %cst_14 {dimension_numbers = #tpu.dot_dimension_numbers<[1], [0], [0], [1], [0, 0, 1, 1], [], []>} : vector<64x256xf32>, vector<256x32xf32>, vector<64x32xf32> -> vector<64x32xf32>
    %58 = tpu.reciprocal %56 {approx = true} : vector<64x32xf32> -> vector<64x32xf32>
    %59 = arith.mulf %57, %58 : vector<64x32xf32>
    %cst_15 = arith.constant dense<0.000000e+00> : vector<64x32xf32>
    %60 = tpu.matmul %59, %12, %cst_15 {dimension_numbers = #tpu.dot_dimension_numbers<[1], [0], [0], [1], [0, 0, 1, 1], [], []>} : vector<64x32xf32>, vector<32x32xf32>, vector<64x32xf32> -> vector<64x32xf32>
    %61 = vector.broadcast %4 : vector<1x32xf32> to vector<64x32xf32>
    %62 = arith.addf %60, %61 : vector<64x32xf32>
    %63 = arith.addf %0, %62 : vector<64x32xf32>
    %cst_16 = arith.constant dense<0.000000e+00> : vector<64xf32>
    %64 = vector.multi_reduction <add>, %63, %cst_16 [1] : vector<64x32xf32> to vector<64xf32>
    %65 = vector.shape_cast %64 : vector<64xf32> to vector<64x1xf32>
    %cst_17 = arith.constant 3.200000e+01 : f32
    %66 = vector.broadcast %cst_17 : f32 to vector<64x1xf32>
    %67 = arith.divf %65, %66 : vector<64x1xf32>
    %68 = vector.broadcast %67 : vector<64x1xf32> to vector<64x32xf32>
    %69 = arith.subf %63, %68 : vector<64x32xf32>
    %70 = arith.mulf %69, %69 : vector<64x32xf32>
    %cst_18 = arith.constant dense<0.000000e+00> : vector<64xf32>
    %71 = vector.multi_reduction <add>, %70, %cst_18 [1] : vector<64x32xf32> to vector<64xf32>
    %72 = vector.shape_cast %71 : vector<64xf32> to vector<64x1xf32>
    %cst_19 = arith.constant 3.200000e+01 : f32
    %73 = vector.broadcast %cst_19 : f32 to vector<64x1xf32>
    %74 = arith.divf %72, %73 : vector<64x1xf32>
    %75 = vector.broadcast %67 : vector<64x1xf32> to vector<64x32xf32>
    %76 = arith.subf %63, %75 : vector<64x32xf32>
    %cst_20 = arith.constant 9.99999974E-6 : f32
    %77 = vector.broadcast %cst_20 : f32 to vector<64x1xf32>
    %78 = arith.addf %74, %77 : vector<64x1xf32>
    %79 = math.rsqrt %78 : vector<64x1xf32>
    %80 = vector.broadcast %79 : vector<64x1xf32> to vector<64x32xf32>
    %81 = arith.mulf %76, %80 : vector<64x32xf32>
    %82 = vector.broadcast %6 : vector<1x32xf32> to vector<64x32xf32>
    %83 = arith.mulf %81, %82 : vector<64x32xf32>
    %84 = vector.broadcast %7 : vector<1x32xf32> to vector<64x32xf32>
    %85 = arith.addf %83, %84 : vector<64x32xf32>
    %cst_21 = arith.constant dense<0.000000e+00> : vector<64x64xf32>
    %86 = tpu.matmul %85, %11, %cst_21 {dimension_numbers = #tpu.dot_dimension_numbers<[1], [0], [0], [1], [0, 0, 1, 1], [], []>} : vector<64x32xf32>, vector<32x64xf32>, vector<64x64xf32> -> vector<64x64xf32>
    %87 = vector.broadcast %3 : vector<1x64xf32> to vector<64x64xf32>
    %88 = arith.addf %86, %87 : vector<64x64xf32>
    %cst_22 = arith.constant 0.000000e+00 : f32
    %89 = vector.broadcast %cst_22 : f32 to vector<64x64xf32>
    %90 = arith.maximumf %88, %89 : vector<64x64xf32>
    %cst_23 = arith.constant dense<0.000000e+00> : vector<64x32xf32>
    %91 = tpu.matmul %90, %13, %cst_23 {dimension_numbers = #tpu.dot_dimension_numbers<[1], [1], [0], [0], [0, 0, 1, 0], [], []>} : vector<64x64xf32>, vector<32x64xf32>, vector<64x32xf32> -> vector<64x32xf32>
    %92 = vector.broadcast %5 : vector<1x32xf32> to vector<64x32xf32>
    %93 = arith.addf %91, %92 : vector<64x32xf32>
    %94 = arith.addf %85, %93 : vector<64x32xf32>
    %cst_24 = arith.constant dense<0.000000e+00> : vector<64xf32>
    %95 = vector.multi_reduction <add>, %94, %cst_24 [1] : vector<64x32xf32> to vector<64xf32>
    %96 = vector.shape_cast %95 : vector<64xf32> to vector<64x1xf32>
    %cst_25 = arith.constant 3.200000e+01 : f32
    %97 = vector.broadcast %cst_25 : f32 to vector<64x1xf32>
    %98 = arith.divf %96, %97 : vector<64x1xf32>
    %99 = vector.broadcast %98 : vector<64x1xf32> to vector<64x32xf32>
    %100 = arith.subf %94, %99 : vector<64x32xf32>
    %101 = arith.mulf %100, %100 : vector<64x32xf32>
    %cst_26 = arith.constant dense<0.000000e+00> : vector<64xf32>
    %102 = vector.multi_reduction <add>, %101, %cst_26 [1] : vector<64x32xf32> to vector<64xf32>
    %103 = vector.shape_cast %102 : vector<64xf32> to vector<64x1xf32>
    %cst_27 = arith.constant 3.200000e+01 : f32
    %104 = vector.broadcast %cst_27 : f32 to vector<64x1xf32>
    %105 = arith.divf %103, %104 : vector<64x1xf32>
    %106 = vector.broadcast %98 : vector<64x1xf32> to vector<64x32xf32>
    %107 = arith.subf %94, %106 : vector<64x32xf32>
    %cst_28 = arith.constant 9.99999974E-6 : f32
    %108 = vector.broadcast %cst_28 : f32 to vector<64x1xf32>
    %109 = arith.addf %105, %108 : vector<64x1xf32>
    %110 = math.rsqrt %109 : vector<64x1xf32>
    %111 = vector.broadcast %110 : vector<64x1xf32> to vector<64x32xf32>
    %112 = arith.mulf %107, %111 : vector<64x32xf32>
    %113 = vector.broadcast %8 : vector<1x32xf32> to vector<64x32xf32>
    %114 = arith.mulf %112, %113 : vector<64x32xf32>
    %115 = vector.broadcast %9 : vector<1x32xf32> to vector<64x32xf32>
    %116 = arith.addf %114, %115 : vector<64x32xf32>
    %c0_29 = arith.constant 0 : index
    %c0_30 = arith.constant 0 : index
    %117 = vector.load %arg3[%c0_29, %c0_30] : memref<64x32xf32, #tpu.memory_space<vmem>>, vector<64x32xf32>
    tpu.vector_store %arg3[%c0_29, %c0_30], %116 {strides = array<i32>} : memref<64x32xf32, #tpu.memory_space<vmem>>, vector<64x32xf32>,
    return
  }
}

</mosaic_0001>

<bundles_post_ra>
// kernel: masked_transformer_encoder_layer.1
= control target key start
LH: loop header
LB: loop body
LE: loop exit
PB: predicated region body
PF: predicated region fallthrough
CT: control target
= control target key end

     0   :  { %8 = vsyncpa [#allocation3], 0  ;;  %s4506_s0 = inlined_call_operand.hbm [shape: f32[64,32], index: 0, kind: input, shape index: {}]   ;;  %s4507_s1 = inlined_call_operand.hbm [shape: f32[32,256], index: 1, kind: input, shape index: {}]   ;;  %s4508_s2 = inlined_call_operand.hbm [shape: f32[8,128], index: 2, kind: input, shape index: {}]   ;;  %s4509_s3 = inlined_call_operand.hbm [shape: f32[64,32], index: 3, kind: output, shape index: {}]  }
   0x1   :  { %9 = vsyncpa [#allocation6], 0 }
   0x2   :  { %10 = vsyncpa [#allocation4], 0  ;;  %s3090_s12 = smov [#allocation5]  }
   0x3   :  { %s28_s13 = sshll.u32 %s3090_s12, 4  ;;  %s29_s13 = int_to_ptr.vmem [resolvable:$true] %s28_s13 }
   0x4   :  { %s3012_s14 = scalar_lea.vmem %s29_s13, 1024  ;;  %p3017_p1 = scmp.lt.s32.totalorder %s29_s13, %s29_s13 }
   0x5   :  { %p3013_p0 = scmp.ne.s32.totalorder %s29_s13, %s3012_s14  ;;  %p3018_p2 = scmp.lt.s32.totalorder %s3012_s14, %s3012_s14 }
   0x7   :  { %p3019_p3 = por %p3018_p2, %p3017_p1 }
   0x9   :  { %p3020_p4 = pnand %p3019_p3, %p3013_p0 }
   0xb   :  { %3023 = shalt.err (!%p3020_p4)
}
   0xc   :  { %s3091_s15 = smov 256   ;;  %s3092_s16 = smov 16  }
   0xd   :  { %34 = dma.hbm_to_vmem [thread:$0]  %s4507_s1, 1024, %s29_s13, [#allocation6], %s3091_s15, %s3091_s15, %s3092_s16  }
   0xe   :  { %s3093_s19 = smov [#allocation2]  }
   0xf   :  { %s16_s20 = sshll.u32 %s3093_s19, 4  ;;  %s17_s20 = int_to_ptr.vmem [resolvable:$true] %s16_s20 }
  0x10   :  { %s3032_s21 = scalar_lea.vmem %s17_s20, 1024  ;;  %p3037_p6 = scmp.lt.s32.totalorder %s17_s20, %s17_s20 }
  0x11   :  { %p3033_p5 = scmp.ne.s32.totalorder %s17_s20, %s3032_s21  ;;  %p3038_p7 = scmp.lt.s32.totalorder %s3032_s21, %s3032_s21 }
  0x13   :  { %p3039_p8 = por %p3038_p7, %p3037_p6 }
  0x15   :  { %p3040_p9 = pnand %p3039_p8, %p3033_p5 }
  0x17   :  { %3043 = shalt.err (!%p3040_p9)
}
  0x18   :  { %s3094_s22 = smov 128   ;;  %s3095_s23 = smov 8  }
  0x19   :  { %22 = dma.hbm_to_vmem [thread:$0]  %s4506_s0, 1024, %s17_s20, [#allocation3], %s3094_s22, %s3094_s22, %s3095_s23  }
  0x1a   :  { %s3096_s1 = smov [#allocation7]  }
  0x1b   :  { %s41_s26 = sshll.u32 %s3096_s1, 4  ;;  %s42_s26 = int_to_ptr.vmem [resolvable:$true] %s41_s26 }
  0x1c   :  { %s3052_s27 = scalar_lea.vmem %s42_s26, 128  ;;  %p3057_p11 = scmp.lt.s32.totalorder %s42_s26, %s42_s26 }
  0x1d   :  { %p3053_p10 = scmp.ne.s32.totalorder %s42_s26, %s3052_s27  ;;  %p3058_p12 = scmp.lt.s32.totalorder %s3052_s27, %s3052_s27 }
  0x1f   :  { %p3059_p13 = por %p3058_p12, %p3057_p11 }
  0x21   :  { %p3060_p0 = pnand %p3059_p13, %p3053_p10 }
  0x23   :  { %3063 = shalt.err (!%p3060_p0)
}
  0x24   :  { %44 = dma.hbm_to_vmem [thread:$0]  %s4508_s2, 128, %s42_s26, [#allocation6]  }
  0x25   :  { %3084 = dma.done.wait [#allocation3], 1024  }
  0x26   :  { %3085 = vsyncadd [#allocation3], 4294966272 }
  0x27   :  { %3086 = dma.done.wait [#allocation6], 1152  }
  0x28   :  { %3087 = vsyncadd [#allocation6], 4294966144  ;;  %v75_v0 = vlaneseq  ;;  %vm4513_vm0 = vcmask 261120   ;;  %v66_v14 = vld [vmem:[#allocation5 + $0x30] sm:$0xff]  ;;  %v65_v15 = vld [vmem:[#allocation5 + $0x20] sm:$0xff]  ;;  %v3097_v26 = vmov 0.0  }
  0x29   :  { %2654 = vmatprep.subr.mxu0 %v66_v14  ;;  %v54_v20 = vld [vmem:[#allocation2] sm:$0xff]  ;;  %v64_v25 = vld [vmem:[#allocation5 + $0x10] sm:$0xff]  ;;  %s3098_s0 = smov 32   ;;  %v55_v42 = vld [vmem:[#allocation2 + $0x8] sm:$0xff]  ;;  %v4602_v63 = vmov 0  ;;  %s3099_s2 = smov 96  }
  0x2a   :  { %v3135_v1 = vshrl.u32 %v75_v0, 7  ;;  %v3137_v2 = vand.u32 127, %v75_v0  ;;  %2655 = vmatpush3.msra.mxu0 %v66_v14  ;;  %2662 = vmatprep.mubr.msk.f32.mxu0 %vm4513_vm0, %v54_v20  ;;  %v63_v34 = vld [vmem:[#allocation5] sm:$0xff]  ;;  %v56_v47 = vld [vmem:[#allocation2 + $0x10] sm:$0xff]  ;;  %v57_v60 = vld [vmem:[#allocation2 + $0x18] sm:$0xff]  ;;  %s3100_s30 = smov 64  }
  0x2b   :  { %2656 = vmatprep.subr.mxu0 %v65_v15  ;;  %s3102_s4 = smov [#allocation8]  }
  0x2c   :  { %4580 = vst [vmem:[#allocation12_spill] sm:$0xff] %v3135_v1  ;;  %4581 = vst [vmem:[#allocation13_spill] sm:$0xff] %v3137_v2  ;;  %v233_v3 = vadd.s32 120, %v3135_v1  ;;  %v249_v4 = vadd.s32 248, %v3135_v1  ;;  %v3142_v5 = vshra.s32 %v3137_v2, 3  ;;  %v231_v6 = vadd.s32 104, %v3135_v1  ;;  %2657 = vmatpush3.msra.mxu0 %v65_v15 }
  0x2d   :  { %v247_v7 = vadd.s32 232, %v3135_v1  ;;  %v232_v8 = vadd.s32 112, %v3135_v1  ;;  %v248_v9 = vadd.s32 240, %v3135_v1  ;;  %v230_v10 = vadd.s32 96, %v3135_v1  ;;  %2658 = vmatprep.subr.mxu0 %v64_v25  ;;  %s2261_s5 = sshll.u32 %s3102_s4, 4  ;;  %s2262_s5 = int_to_ptr.vmem [resolvable:$true] %s2261_s5 }
  0x2e   :  { %v267_v11 = vshra.s32 %v233_v3, 6  ;;  %v283_v12 = vshra.s32 %v249_v4, 6  ;;  %v265_v13 = vshra.s32 %v231_v6, 6  ;;  %v246_v19 = vadd.s32 224, %v3135_v1  ;;  %2659 = vmatpush3.msra.mxu0 %v64_v25  ;;  %v58_v3 = vld [vmem:[#allocation2 + $0x20] sm:$0xff]  ;;  %v60_v25 = vld [vmem:[#allocation2 + $0x30] sm:$0xff]  ;;  %p3069_p2 = scmp.lt.s32.totalorder %s2262_s5, %s2262_s5 }
  0x2f   :  { %v281_v16 = vshra.s32 %v247_v7, 6  ;;  %v266_v17 = vshra.s32 %v232_v8, 6  ;;  %v282_v18 = vshra.s32 %v248_v9, 6  ;;  %v264_v24 = vshra.s32 %v230_v10, 6  ;;  %2660 = vmatprep.subr.mxu0 %v63_v34  ;;  %s3064_s6 = scalar_lea.vmem %s2262_s5, 1024 }
  0x30   :  { %vm3151_vm1 = vcmp.eq.s32.totalorder %v267_v11, %v3142_v5  ;;  %vm3156_vm2 = vcmp.eq.s32.totalorder %v283_v12, %v3142_v5  ;;  %vm3161_vm3 = vcmp.eq.s32.totalorder %v265_v13, %v3142_v5  ;;  %v280_v39 = vshra.s32 %v246_v19, 6  ;;  %2661 = vmatpush3.msra.mxu0 %v63_v34  ;;  %p3065_p1 = scmp.ne.s32.totalorder %s2262_s5, %s3064_s6  ;;  %p3070_p3 = scmp.lt.s32.totalorder %s3064_s6, %s3064_s6 }
  0x31   :  { %v2297_v27 = vsel %vm3151_vm1, 1.0, %v3097_v26  ;;  %v2313_v28 = vsel %vm3156_vm2, 1.0, %v3097_v26  ;;  %vm3173_vm4 = vcmp.eq.s32.totalorder %v281_v16, %v3142_v5  ;;  %v2295_v30 = vsel %vm3161_vm3, 1.0, %v3097_v26  ;;  %2663 = vmatmul.mubr.msk.f32.vlgmr.msra.gmra.mxu0 %vm4513_vm0, %v55_v42 }
  0x32   :  { %v3180_v31 = vpack.i.bf16 %v2297_v27, %v2313_v28  ;;  %v2311_v32 = vsel %vm3173_vm4, 1.0, %v3097_v26  ;;  %vm3186_vm5 = vcmp.eq.s32.totalorder %v266_v17, %v3142_v5  ;;  %vm3193_vm6 = vcmp.eq.s32.totalorder %v282_v18, %v3142_v5  ;;  %2665 = vmatprep.mubr.msk.f32.mxu0 %vm4513_vm0, %v56_v47  ;;  %v59_v17 = vld [vmem:[#allocation2 + $0x28] sm:$0xff]  ;;  %p3071_p4 = por %p3070_p3, %p3069_p2 }
  0x33   :  { %v3190_v35 = vpack.i.bf16 %v2295_v30, %v2311_v32  ;;  %v2296_v37 = vsel %vm3186_vm5, 1.0, %v3097_v26  ;;  %v2312_v38 = vsel %vm3193_vm6, 1.0, %v3097_v26  ;;  %vm3206_vm7 = vcmp.eq.s32.totalorder %v264_v24, %v3142_v5 }
  0x34   :  { %2756 = vrot.lane.b32.xlu0 %v3180_v31, %s3098_s0  ;;  %v229_v41 = vadd.s32 88, %v3135_v1  ;;  %v3213_v43 = vpack.i.bf16 %v2296_v37, %v2312_v38  ;;  %v2294_v44 = vsel %vm3206_vm7, 1.0, %v3097_v26  ;;  %v245_v45 = vadd.s32 216, %v3135_v1  ;;  %p3072_p5 = pnand %p3071_p4, %p3065_p1 }
  0x35   :  { %2766 = vrot.lane.b32.xlu1 %v3190_v35, %s3098_s0  ;;  %v228_v46 = vadd.s32 80, %v3135_v1  ;;  %vm3221_vm8 = vcmp.eq.s32.totalorder %v280_v39, %v3142_v5  ;;  %v244_v50 = vadd.s32 208, %v3135_v1  ;;  %v227_v51 = vadd.s32 72, %v3135_v1  ;;  %2666 = vmatmul.mubr.msk.f32.gmra.mxu0 %vm4513_vm0, %v57_v60 }
  0x36   :  { %v263_v49 = vshra.s32 %v229_v41, 6  ;;  %v2310_v52 = vsel %vm3221_vm8, 1.0, %v3097_v26  ;;  %v279_v53 = vshra.s32 %v245_v45, 6  ;;  %v243_v55 = vadd.s32 200, %v3135_v1  ;;  %2668 = vmatprep.mubr.msk.f32.mxu0 %vm4513_vm0, %v58_v3 }
  0x37   :  { %v262_v54 = vshra.s32 %v228_v46, 6  ;;  %v3234_v56 = vpack.i.bf16 %v2294_v44, %v2310_v52  ;;  %v278_v58 = vshra.s32 %v244_v50, 6  ;;  %v261_v59 = vshra.s32 %v227_v51, 6  ;;  %v61_v46 = vld [vmem:[#allocation2 + $0x38] sm:$0xff] }
  0x38   :  { %2761 = vrot.lane.b32.xlu0 %v3213_v43, %s3098_s0  ;;  %vm3237_vm9 = vcmp.eq.s32.totalorder %v263_v49, %v3142_v5  ;;  %vm3243_vm10 = vcmp.eq.s32.totalorder %v279_v53, %v3142_v5  ;;  %v277_v0 = vshra.s32 %v243_v55, 6  ;;  %v4606_v8 = vmov 0 }
  0x39   :  { %v2293_v62 = vsel %vm3237_vm9, 1.0, %v3097_v26  ;;  %vm3251_vm11 = vcmp.eq.s32.totalorder %v262_v54, %v3142_v5  ;;  %2771 = vrot.lane.b32.xlu1 %v3234_v56, %s3098_s0  ;;  %v2309_v4 = vsel %vm3243_vm10, 1.0, %v3097_v26  ;;  %vm3261_vm12 = vcmp.eq.s32.totalorder %v278_v58, %v3142_v5  ;;  %2669 = vmatmul.mubr.msk.f32.gmra.mxu0 %vm4513_vm0, %v59_v17 }
  0x3a   :  { %v4603_v63 = vsel %vm3251_vm11, 4294967295, %v4602_v63  ;;  %v2292_v7 = vsel %vm3251_vm11, 1.0, %v3097_v26  ;;  %vm3269_vm13 = vcmp.eq.s32.totalorder %v261_v59, %v3142_v5  ;;  %v3273_v9 = vpack.i.bf16 %v2293_v62, %v2309_v4  ;;  %2671 = vmatprep.mubr.msk.f32.mxu0 %vm4513_vm0, %v60_v25 }
  0x3b   :  { %v4607_v8 = vsel %vm3269_vm13, 4294967295, %v4606_v8  ;;  %v2308_v10 = vsel %vm3261_vm12, 1.0, %v3097_v26  ;;  %vm3279_vm14 = vcmp.eq.s32.totalorder %v277_v0, %v3142_v5  ;;  %v4608_v11 = vmov 0 }
  0x3c   :  { %v4609_v11 = vsel %vm3279_vm14, 4294967295, %v4608_v11  ;;  %v2291_v12 = vsel %vm3269_vm13, 1.0, %v3097_v26  ;;  %v3287_v13 = vpack.i.bf16 %v2292_v7, %v2308_v10  ;;  %v2307_v14 = vsel %vm3279_vm14, 1.0, %v3097_v26  ;;  %2776 = vrot.lane.b32.xlu0 %v3273_v9, %s3098_s0 }
  0x3d   :  { %v226_v15 = vadd.s32 64, %v3135_v1  ;;  %v242_v16 = vadd.s32 192, %v3135_v1  ;;  %v3297_v18 = vpack.i.bf16 %v2291_v12, %v2307_v14  ;;  %v3300_v19 = vadd.s32 56, %v3135_v1 }
  0x3e   :  { %v241_v20 = vadd.s32 184, %v3135_v1  ;;  %v3304_v24 = vadd.s32 48, %v3135_v1  ;;  %2781 = vrot.lane.b32.xlu1 %v3287_v13, %s3098_s0  ;;  %v240_v30 = vadd.s32 176, %v3135_v1  ;;  %v3310_v32 = vadd.s32 40, %v3135_v1 }
  0x3f   :  { %4610 = vst [vmem:[#allocation14_spill] sm:$0xff] %v3300_v19  ;;  %v260_v27 = vshra.s32 %v226_v15, 6  ;;  %v276_v28 = vshra.s32 %v242_v16, 6  ;;  %v259_v34 = vshra.s32 %v3300_v19, 6  ;;  %v239_v39 = vadd.s32 168, %v3135_v1 }
  0x40   :  { %4611 = vst [vmem:[#allocation15_spill] sm:$0xff] %v3304_v24  ;;  %4612 = vst [vmem:[#allocation16_spill] sm:$0xff] %v3310_v32  ;;  %v275_v37 = vshra.s32 %v241_v20, 6  ;;  %v258_v38 = vshra.s32 %v3304_v24, 6  ;;  %v4613_v41 = vmov 0  ;;  %v274_v44 = vshra.s32 %v240_v30, 6  ;;  %2786 = vrot.lane.b32.xlu0 %v3297_v18, %s3098_s0 }
  0x41   :  { %vm3317_vm15 = vcmp.eq.s32.totalorder %v260_v27, %v3142_v5  ;;  %vm3322_vm13 = vcmp.eq.s32.totalorder %v276_v28, %v3142_v5  ;;  %v257_v45 = vshra.s32 %v3310_v32, 6  ;;  %vm3337_vm14 = vcmp.eq.s32.totalorder %v259_v34, %v3142_v5 }
  0x42   :  { %v4614_v41 = vsel %vm3317_vm15, 4294967295, %v4613_v41  ;;  %v2290_v47 = vsel %vm3317_vm15, 1.0, %v3097_v26  ;;  %v2306_v49 = vsel %vm3322_vm13, 1.0, %v3097_v26  ;;  %v4617_v50 = vmov 0 }
  0x43   :  { %v4618_v50 = vsel %vm3337_vm14, 4294967295, %v4617_v50  ;;  %vm3342_vm11 = vcmp.eq.s32.totalorder %v275_v37, %v3142_v5  ;;  %v4619_v51 = vmov 0  ;;  %v3346_v52 = vpack.i.bf16 %v2290_v47, %v2306_v49 }
  0x44   :  { %v4620_v51 = vsel %vm3342_vm11, 4294967295, %v4619_v51  ;;  %v2289_v53 = vsel %vm3337_vm14, 1.0, %v3097_v26  ;;  %v2305_v54 = vsel %vm3342_vm11, 1.0, %v3097_v26  ;;  %vm3355_vm0 = vcmp.eq.s32.totalorder %v258_v38, %v3142_v5 }
  0x45   :  { %v4621_v55 = vmov 0  ;;  %v3359_v58 = vpack.i.bf16 %v2289_v53, %v2305_v54  ;;  %vm3362_vm15 = vcmp.eq.s32.totalorder %v274_v44, %v3142_v5  ;;  %v4623_v59 = vmov 0  ;;  %2791 = vrot.lane.b32.xlu1 %v3346_v52, %s3098_s0 }
  0x46   :  { %v4622_v55 = vsel %vm3355_vm0, 4294967295, %v4621_v55  ;;  %v4624_v59 = vsel %vm3362_vm15, 4294967295, %v4623_v59  ;;  %v2288_v60 = vsel %vm3355_vm0, 1.0, %v3097_v26  ;;  %v273_v62 = vshra.s32 %v239_v39, 6 }
  0x47   :  { %vm4625_vm14 = vcmask 261120   ;;  %v2304_v0 = vsel %vm3362_vm15, 1.0, %v3097_v26  ;;  %vm3376_vm11 = vcmp.eq.s32.totalorder %v257_v45, %v3142_v5  ;;  %v4626_v3 = vmov 0  ;;  %2796 = vrot.lane.b32.xlu0 %v3359_v58, %s3098_s0 }
  0x48   :  { %2672 = vmatmul.mubr.msk.f32.gmra.mxu0 %vm4625_vm14, %v61_v46  ;;  %v4627_v3 = vsel %vm3376_vm11, 4294967295, %v4626_v3  ;;  %v3381_v4 = vadd.s32 32, %v3135_v1  ;;  %v238_v7 = vadd.s32 160, %v3135_v1  ;;  %v3386_v10 = vpack.i.bf16 %v2288_v60, %v2304_v0 }
  0x49   :  { %vm3389_vm14 = vcmp.eq.s32.totalorder %v273_v62, %v3142_v5  ;;  %v4629_v12 = vmov 0  ;;  %v2287_v14 = vsel %vm3376_vm11, 1.0, %v3097_v26  ;;  %v3397_v15 = vadd.s32 24, %v3135_v1 }
  0x4a   :  { %4628 = vst [vmem:[#allocation17_spill] sm:$0xff] %v3381_v4  ;;  %v4630_v12 = vsel %vm3389_vm14, 4294967295, %v4629_v12  ;;  %v2303_v16 = vsel %vm3389_vm14, 1.0, %v3097_v26  ;;  %v256_v17 = vshra.s32 %v3381_v4, 6  ;;  %v272_v20 = vshra.s32 %v238_v7, 6  ;;  %2801 = vrot.lane.b32.xlu1 %v3386_v10, %s3098_s0 }
  0x4b   :  { %4631 = vst [vmem:[#allocation18_spill] sm:$0xff] %v3397_v15  ;;  %v237_v25 = vadd.s32 152, %v3135_v1  ;;  %v3404_v27 = vpack.i.bf16 %v2287_v14, %v2303_v16  ;;  %v255_v28 = vshra.s32 %v3397_v15, 6  ;;  %v3408_v30 = vadd.s32 16, %v3135_v1 }
  0x4c   :  { %v236_v34 = vadd.s32 144, %v3135_v1  ;;  %vm3414_vm11 = vcmp.eq.s32.totalorder %v256_v17, %v3142_v5  ;;  %v4633_v37 = vmov 0  ;;  %vm3419_vm14 = vcmp.eq.s32.totalorder %v272_v20, %v3142_v5 }
  0x4d   :  { %4632 = vst [vmem:[#allocation19_spill] sm:$0xff] %v3408_v30  ;;  %v4634_v37 = vsel %vm3414_vm11, 4294967295, %v4633_v37  ;;  %v271_v39 = vshra.s32 %v237_v25, 6  ;;  %v3424_v44 = vadd.s32 8, %v3135_v1  ;;  %2806 = vrot.lane.b32.xlu0 %v3404_v27, %s3098_s0  ;;  %v2286_v45 = vsel %vm3414_vm11, 1.0, %v3097_v26 }
  0x4e   :  { %v2302_v46 = vsel %vm3419_vm14, 1.0, %v3097_v26  ;;  %vm3435_vm0 = vcmp.eq.s32.totalorder %v255_v28, %v3142_v5  ;;  %v4638_v47 = vmov 0  ;;  %v254_v49 = vshra.s32 %v3408_v30, 6 }
  0x4f   :  { %4637 = vst [vmem:[#allocation20_spill] sm:$0xff] %v3424_v44  ;;  %v4639_v47 = vsel %vm3435_vm0, 4294967295, %v4638_v47  ;;  %v3440_v53 = vpack.i.bf16 %v2286_v45, %v2302_v46  ;;  %vm3443_vm15 = vcmp.eq.s32.totalorder %v271_v39, %v3142_v5  ;;  %v4641_v54 = vmov 0 }
  0x50   :  { %4640 = vst [vmem:[#allocation21_spill] sm:$0xff] %v4639_v47  ;;  %v4642_v54 = vsel %vm3443_vm15, 4294967295, %v4641_v54  ;;  %v2285_v60 = vsel %vm3435_vm0, 1.0, %v3097_v26  ;;  %v270_v62 = vshra.s32 %v236_v34, 6  ;;  %v2301_v0 = vsel %vm3443_vm15, 1.0, %v3097_v26 }
  0x51   :  { %vm3454_vm11 = vcmp.eq.s32.totalorder %v254_v49, %v3142_v5  ;;  %v4643_v7 = vmov 0  ;;  %v235_v14 = vadd.s32 136, %v3135_v1  ;;  %v253_v16 = vshra.s32 %v3424_v44, 6  ;;  %2811 = vrot.lane.b32.xlu1 %v3440_v53, %s3098_s0 }
  0x52   :  { %v4644_v7 = vsel %vm3454_vm11, 4294967295, %v4643_v7  ;;  %v3462_v17 = vpack.i.bf16 %v2285_v60, %v2301_v0  ;;  %vm3465_vm0 = vcmp.eq.s32.totalorder %v270_v62, %v3142_v5  ;;  %v4646_v20 = vmov 0 }
  0x53   :  { %4645 = vst [vmem:[#allocation22_spill] sm:$0xff] %v4644_v7  ;;  %v4647_v20 = vsel %vm3465_vm0, 4294967295, %v4646_v20  ;;  %v2284_v25 = vsel %vm3454_vm11, 1.0, %v3097_v26  ;;  %v234_v28 = vadd.s32 128, %v3135_v1  ;;  %v2300_v34 = vsel %vm3465_vm0, 1.0, %v3097_v26 }
  0x54   :  { %4648 = vst [vmem:[#allocation23_spill] sm:$0xff] %v4647_v20  ;;  %v269_v39 = vshra.s32 %v235_v14, 6  ;;  %vm3477_vm15 = vcmp.eq.s32.totalorder %v253_v16, %v3142_v5  ;;  %v4649_v45 = vmov 0  ;;  %v252_v46 = vshra.s32 %v3135_v1, 6  ;;  %2816 = vrot.lane.b32.xlu0 %v3462_v17, %s3098_s0 }
  0x55   :  { %v4650_v45 = vsel %vm3477_vm15, 4294967295, %v4649_v45  ;;  %v3484_v49 = vpack.i.bf16 %v2284_v25, %v2300_v34  ;;  %v2283_v60 = vsel %vm3477_vm15, 1.0, %v3097_v26  ;;  %v268_v62 = vshra.s32 %v234_v28, 6 }
  0x56   :  { %4651 = vst [vmem:[#allocation24_spill] sm:$0xff] %v4650_v45  ;;  %vm3490_vm11 = vcmp.eq.s32.totalorder %v269_v39, %v3142_v5  ;;  %v4652_v0 = vmov 0  ;;  %vm3495_vm0 = vcmp.eq.s32.totalorder %v252_v46, %v3142_v5  ;;  %v4655_v14 = vmov 0 }
  0x57   :  { %v4653_v0 = vsel %vm3490_vm11, 4294967295, %v4652_v0  ;;  %v4656_v14 = vsel %vm3495_vm0, 4294967295, %v4655_v14  ;;  %2821 = vrot.lane.b32.xlu1 %v3484_v49, %s3098_s0  ;;  %v2299_v16 = vsel %vm3490_vm11, 1.0, %v3097_v26  ;;  %vm3505_vm15 = vcmp.eq.s32.totalorder %v268_v62, %v3142_v5  ;;  %v62_v62 = vld [vmem:[#allocation7] sm:$0xff] }
  0x58   :  { %4654 = vst [vmem:[#allocation25_spill] sm:$0xff] %v4653_v0  ;;  %4657 = vst [vmem:[#allocation26_spill] sm:$0xff] %v4656_v14  ;;  %v4658_v25 = vmov 0  ;;  %v2282_v28 = vsel %vm3495_vm0, 1.0, %v3097_v26  ;;  %v3512_v34 = vpack.i.bf16 %v2283_v60, %v2299_v16  ;;  %v2298_v39 = vsel %vm3505_vm15, 1.0, %v3097_v26 }
  0x59   :  { %v4659_v25 = vsel %vm3505_vm15, 4294967295, %v4658_v25  ;;  %v3517_v46 = vpack.i.bf16 %v2282_v28, %v2298_v39  ;;  %v77_v5 = vsub.s32 0, %v3135_v1  ;;  %vm4662_vm0 = vcmask 261120  }
  0x5a   :  { %4660 = vst [vmem:[#allocation27_spill] sm:$0xff] %v4659_v25  ;;  %2826 = vrot.lane.b32.xlu0 %v3512_v34, %s3098_s0  ;;  %v4688_v6 = vld [vmem:[#allocation22_spill] sm:$0xff] }
  0x5b   :  { %2831 = vrot.lane.b32.xlu1 %v3517_v46, %s3098_s0  ;;  %v78_v24 = vrot.slane %v62_v62, %v77_v5 }
  0xa6   :  { %v2757_v28 = vpop.permute.xlu0 %2756 }
  0xa7   :  { %v2759_v30 = vunpack.i.h.bf16 %v2757_v28  ;;  %v2758_v44 = vunpack.i.l.bf16 %v2757_v28  ;;  %v2767_v62 = vpop.permute.xlu1 %2766 }
  0xa8   :  { %v2769_v28 = vunpack.i.h.bf16 %v2767_v62 }
  0xaa   :  { %v2762_v2 = vpop.permute.xlu0 %2761 }
  0xab   :  { %v2764_v5 = vunpack.i.h.bf16 %v2762_v2  ;;  %v2763_v25 = vunpack.i.l.bf16 %v2762_v2  ;;  %v2772_v2 = vpop.permute.xlu1 %2771 }
  0xf1   :  { %v2664_v19 = vpop.f32.mrf.mxu0 }
  0xf3   :  { %v170_v32 = vpop.f32.mrf.mxu0 }
  0xf4   :  { %v3524_v60 = vadd.f32 %v170_v32, %v78_v24 }
  0xf5   :  { %v2667_v16 = vpop.f32.mrf.mxu0 }
  0xf6   :  { %v3527_v4 = vmul.f32 0.35355338, %v3524_v60 }
  0xf7   :  { %v180_v26 = vpop.f32.mrf.mxu0 }
  0xf8   :  { %4661 = vst [vmem:[#allocation28_spill] sm:$0xff] %v3527_v4  ;;  %2490 = vmatprep.mubr.msk.f32.mxu1 %vm4662_vm0, %v3527_v4  ;;  %v2768_v4 = vunpack.i.l.bf16 %v2767_v62  ;;  %v2777_v62 = vpop.permute.xlu0 %2776 }
  0xf9   :  { %v2670_v39 = vpop.f32.mrf.mxu0 }
  0xfa   :  { %v3539_v20 = vadd.f32 %v2670_v39, %v78_v24  ;;  %v2778_v39 = vunpack.i.l.bf16 %v2777_v62 }
  0xfb   :  { %v190_v15 = vpop.f32.mrf.mxu0 }
 0x108   :  { %v2673_v1 = vpop.f32.mrf.mxu0 }
 0x109   :  { %v3531_v14 = vadd.f32 %v2673_v1, %v78_v24 }
 0x10a   :  { %v200_v32 = vpop.f32.mrf.mxu0 }
 0x10b   :  { %v3533_v45 = vadd.f32 %v200_v32, %v78_v24  ;;  %v540_v0 = vmul.f32 %v2758_v44, %v3531_v14  ;;  %v524_v7 = vmul.f32 %v2759_v30, %v3531_v14  ;;  %v2774_v44 = vunpack.i.h.bf16 %v2772_v2 }
 0x10c   :  { %v2773_v30 = vunpack.i.l.bf16 %v2772_v2  ;;  %v3545_v32 = vadd.f32 %v190_v15, %v78_v24  ;;  %v2782_v2 = vpop.permute.xlu1 %2781 }
 0x10d   :  { %763 = vrot.lane.b32.xlu0 %v540_v0, %s3099_s2  ;;  %731 = vrot.lane.b32.xlu1 %v524_v7, %s3099_s2  ;;  %v539_v1 = vmul.f32 %v2763_v25, %v3533_v45  ;;  %v523_v47 = vmul.f32 %v2764_v5, %v3533_v45  ;;  %v538_v0 = vmul.f32 %v2768_v4, %v3539_v20  ;;  %v2779_v25 = vunpack.i.h.bf16 %v2777_v62  ;;  %v2787_v62 = vpop.permute.xlu0 %2786 }
 0x10e   :  { %v522_v7 = vmul.f32 %v2769_v28, %v3539_v20  ;;  %v3551_v5 = vadd.f32 %v2667_v16, %v78_v24  ;;  %v2784_v4 = vunpack.i.h.bf16 %v2782_v2  ;;  %v2783_v15 = vunpack.i.l.bf16 %v2782_v2 }
 0x10f   :  { %v3557_v28 = vadd.f32 %v180_v26, %v78_v24  ;;  %v2789_v16 = vunpack.i.h.bf16 %v2787_v62 }
 0x110   :  { %v2792_v26 = vpop.permute.xlu1 %2791 }
 0x111   :  { %761 = vrot.lane.b32.xlu0 %v539_v1, %s3099_s2  ;;  %729 = vrot.lane.b32.xlu1 %v523_v47, %s3099_s2  ;;  %v537_v1 = vmul.f32 %v2773_v30, %v3545_v32  ;;  %v521_v47 = vmul.f32 %v2774_v44, %v3545_v32  ;;  %v2788_v44 = vunpack.i.l.bf16 %v2787_v62  ;;  %v3563_v30 = vadd.f32 %v2664_v19, %v78_v24  ;;  %v2797_v19 = vpop.permute.xlu0 %2796 }
 0x112   :  { %v2799_v24 = vunpack.i.h.bf16 %v2797_v19 }
 0x113   :  { %v534_v2 = vmul.f32 %v2788_v44, %v3563_v30 }
 0x114   :  { %v2802_v62 = vpop.permute.xlu1 %2801 }
 0x115   :  { %759 = vrot.lane.b32.xlu0 %v538_v0, %s3099_s2  ;;  %727 = vrot.lane.b32.xlu1 %v522_v7, %s3099_s2  ;;  %v536_v0 = vmul.f32 %v2778_v39, %v3551_v5  ;;  %v520_v7 = vmul.f32 %v2779_v25, %v3551_v5  ;;  %v2794_v39 = vunpack.i.h.bf16 %v2792_v26  ;;  %v2793_v25 = vunpack.i.l.bf16 %v2792_v26  ;;  %v2807_v26 = vpop.permute.xlu0 %2806 }
 0x116   :  { %v2803_v44 = vunpack.i.l.bf16 %v2802_v62 }
 0x119   :  { %757 = vrot.lane.b32.xlu0 %v537_v1, %s3099_s2  ;;  %725 = vrot.lane.b32.xlu1 %v521_v47, %s3099_s2  ;;  %v535_v1 = vmul.f32 %v2783_v15, %v3557_v28  ;;  %v519_v47 = vmul.f32 %v2784_v4, %v3557_v28  ;;  %v2798_v15 = vunpack.i.l.bf16 %v2797_v19  ;;  %v533_v4 = vmul.f32 %v2793_v25, %v3524_v60  ;;  %v2812_v19 = vpop.permute.xlu1 %2811 }
 0x11a   :  { %v2808_v25 = vunpack.i.l.bf16 %v2807_v26 }
 0x11d   :  { %755 = vrot.lane.b32.xlu0 %v536_v0, %s3099_s2  ;;  %723 = vrot.lane.b32.xlu1 %v520_v7, %s3099_s2  ;;  %v518_v0 = vmul.f32 %v2789_v16, %v3563_v30  ;;  %v517_v7 = vmul.f32 %v2794_v39, %v3524_v60  ;;  %v532_v16 = vmul.f32 %v2798_v15, %v3531_v14  ;;  %v2813_v15 = vunpack.i.l.bf16 %v2812_v19 }
 0x11e   :  { %v531_v39 = vmul.f32 %v2803_v44, %v3533_v45 }
 0x121   :  { %753 = vrot.lane.b32.xlu0 %v535_v1, %s3099_s2  ;;  %721 = vrot.lane.b32.xlu1 %v519_v47, %s3099_s2  ;;  %v2804_v1 = vunpack.i.h.bf16 %v2802_v62  ;;  %v516_v47 = vmul.f32 %v2799_v24, %v3531_v14  ;;  %v530_v24 = vmul.f32 %v2808_v25, %v3539_v20  ;;  %v2817_v62 = vpop.permute.xlu0 %2816 }
 0x122   :  { %v2818_v44 = vunpack.i.l.bf16 %v2817_v62 }
 0x125   :  { %751 = vrot.lane.b32.xlu0 %v534_v2, %s3099_s2  ;;  %719 = vrot.lane.b32.xlu1 %v518_v0, %s3099_s2  ;;  %v2809_v2 = vunpack.i.h.bf16 %v2807_v26  ;;  %v515_v0 = vmul.f32 %v2804_v1, %v3533_v45  ;;  %v529_v1 = vmul.f32 %v2813_v15, %v3545_v32  ;;  %v2822_v26 = vpop.permute.xlu1 %2821 }
 0x126   :  { %v2823_v25 = vunpack.i.l.bf16 %v2822_v26 }
 0x129   :  { %749 = vrot.lane.b32.xlu0 %v533_v4, %s3099_s2  ;;  %717 = vrot.lane.b32.xlu1 %v517_v7, %s3099_s2  ;;  %v2814_v4 = vunpack.i.h.bf16 %v2812_v19  ;;  %v514_v7 = vmul.f32 %v2809_v2, %v3539_v20  ;;  %v528_v2 = vmul.f32 %v2818_v44, %v3551_v5  ;;  %v2827_v19 = vpop.permute.xlu0 %2826 }
 0x12a   :  { %v2828_v15 = vunpack.i.l.bf16 %v2827_v19 }
 0x12d   :  { %747 = vrot.lane.b32.xlu0 %v532_v16, %s3099_s2  ;;  %715 = vrot.lane.b32.xlu1 %v516_v47, %s3099_s2  ;;  %v2819_v16 = vunpack.i.h.bf16 %v2817_v62  ;;  %v513_v47 = vmul.f32 %v2814_v4, %v3545_v32  ;;  %v527_v4 = vmul.f32 %v2823_v25, %v3557_v28  ;;  %v2832_v62 = vpop.permute.xlu1 %2831 }
 0x12e   :  { %v2833_v44 = vunpack.i.l.bf16 %v2832_v62 }
 0x131   :  { %745 = vrot.lane.b32.xlu0 %v531_v39, %s3099_s2  ;;  %713 = vrot.lane.b32.xlu1 %v515_v0, %s3099_s2  ;;  %v2824_v39 = vunpack.i.h.bf16 %v2822_v26  ;;  %v512_v0 = vmul.f32 %v2819_v16, %v3551_v5  ;;  %v526_v16 = vmul.f32 %v2828_v15, %v3563_v30  ;;  %v525_v26 = vmul.f32 %v2833_v44, %v3524_v60 }
 0x135   :  { %743 = vrot.lane.b32.xlu0 %v530_v24, %s3099_s2  ;;  %711 = vrot.lane.b32.xlu1 %v514_v7, %s3099_s2  ;;  %v2829_v24 = vunpack.i.h.bf16 %v2827_v19  ;;  %v511_v7 = vmul.f32 %v2824_v39, %v3557_v28 }
 0x139   :  { %741 = vrot.lane.b32.xlu0 %v529_v1, %s3099_s2  ;;  %709 = vrot.lane.b32.xlu1 %v513_v47, %s3099_s2  ;;  %v2834_v1 = vunpack.i.h.bf16 %v2832_v62  ;;  %v510_v47 = vmul.f32 %v2829_v24, %v3563_v30  ;;  %v4716_v24 = vld [vmem:[#allocation28_spill] sm:$0xff] }
 0x13b   :  { %v509_v25 = vmul.f32 %v2834_v1, %v3524_v60 }
 0x13d   :  { %739 = vrot.lane.b32.xlu0 %v528_v2, %s3099_s2  ;;  %707 = vrot.lane.b32.xlu1 %v512_v0, %s3099_s2  ;;  %v210_v2 = vmul.f32 0.35355338, %v3563_v30 }
 0x141   :  { %737 = vrot.lane.b32.xlu0 %v527_v4, %s3099_s2  ;;  %705 = vrot.lane.b32.xlu1 %v511_v7, %s3099_s2 }
 0x145   :  { %735 = vrot.lane.b32.xlu0 %v526_v16, %s3099_s2  ;;  %703 = vrot.lane.b32.xlu1 %v510_v47, %s3099_s2  ;;  %v211_v16 = vmul.f32 0.35355338, %v3557_v28 }
 0x149   :  { %733 = vrot.lane.b32.xlu0 %v525_v26, %s3099_s2  ;;  %701 = vrot.lane.b32.xlu1 %v509_v25, %s3099_s2 }
 0x14d   :  { %2836 = vrot.lane.b32.xlu0 %v3180_v31, %s3100_s30  ;;  %2841 = vrot.lane.b32.xlu1 %v3213_v43, %s3100_s30  ;;  %v3101_v31 = vmov 1.0  }
 0x14e   :  { %2506 = vmatprep.subr.msk.mxu0 %vm3156_vm2, %v3101_v31  ;;  %vm4664_vm2 = vmmov %vm4662_vm0 }
 0x14f   :  { %2507 = vmatpush3.msk.msra.mxu0 %vm3151_vm1, %v3101_v31  ;;  %vm4663_vm1 = vmmov %vm4662_vm0 }
 0x150   :  { %2508 = vmatprep.subr.msk.mxu0 %vm3193_vm6, %v3101_v31  ;;  %vm4668_vm6 = vnez %v4607_v8 }
 0x151   :  { %2846 = vrot.lane.b32.xlu0 %v3190_v35, %s3100_s30  ;;  %2851 = vrot.lane.b32.xlu1 %v3234_v56, %s3100_s30  ;;  %v4683_v56 = vld [vmem:[#allocation21_spill] sm:$0xff] }
 0x152   :  { %2509 = vmatpush3.msk.msra.mxu0 %vm3186_vm5, %v3101_v31  ;;  %vm4667_vm5 = vnez %v4609_v11 }
 0x153   :  { %2510 = vmatprep.subr.msk.mxu0 %vm3173_vm4, %v3101_v31  ;;  %vm4666_vm4 = vmmov %vm4662_vm0 }
 0x154   :  { %2511 = vmatpush3.msk.msra.mxu0 %vm3161_vm3, %v3101_v31  ;;  %vm4665_vm3 = vnez %v4603_v63  ;;  %v4685_v63 = vld [vmem:[#allocation23_spill] sm:$0xff] }
 0x155   :  { %2856 = vrot.lane.b32.xlu0 %v3273_v9, %s3100_s30  ;;  %2861 = vrot.lane.b32.xlu1 %v3287_v13, %s3100_s30  ;;  %v4692_v9 = vld [vmem:[#allocation24_spill] sm:$0xff] }
 0x156   :  { %2512 = vmatprep.subr.msk.mxu0 %vm3221_vm8, %v3101_v31  ;;  %vm4670_vm8 = vnez %v4614_v41  ;;  %v4696_v41 = vld [vmem:[#allocation26_spill] sm:$0xff] }
 0x157   :  { %2513 = vmatpush3.msk.msra.mxu0 %vm3206_vm7, %v3101_v31  ;;  %vm4669_vm7 = vmmov %vm4662_vm0 }
 0x158   :  { %2514 = vmatprep.subr.msk.mxu0 %vm3243_vm10, %v3101_v31  ;;  %vm4672_vm10 = vnez %v4620_v51 }
 0x159   :  { %2866 = vrot.lane.b32.xlu0 %v3297_v18, %s3100_s30  ;;  %2871 = vrot.lane.b32.xlu1 %v3346_v52, %s3100_s30  ;;  %v215_v18 = vmul.f32 0.35355338, %v3533_v45 }
 0x15a   :  { %2515 = vmatpush3.msk.msra.mxu0 %vm3237_vm9, %v3101_v31  ;;  %vm4671_vm9 = vmmov %vm4662_vm0 }
 0x15b   :  { %2516 = vmatprep.subr.msk.mxu0 %vm3261_vm12, %v3101_v31  ;;  %vm4673_vm12 = vnez %v4618_v50 }
 0x15c   :  { %2517 = vmatpush3.msk.msra.mxu0 %vm4665_vm3, %v3101_v31  ;;  %vm4677_vm3 = vnez %v4630_v12 }
 0x15d   :  { %2876 = vrot.lane.b32.xlu0 %v3359_v58, %s3100_s30  ;;  %2881 = vrot.lane.b32.xlu1 %v3386_v10, %s3100_s30 }
 0x15e   :  { %2518 = vmatprep.subr.msk.mxu0 %vm4667_vm5, %v3101_v31  ;;  %vm4679_vm5 = vmmov %vm4663_vm1 }
 0x15f   :  { %2519 = vmatpush3.msk.msra.mxu0 %vm4668_vm6, %v3101_v31  ;;  %vm4680_vm6 = vnez %v4634_v37 }
 0x160   :  { %2520 = vmatprep.subr.msk.mxu0 %vm3322_vm13, %v3101_v31  ;;  %vm4675_vm13 = vnez %v4622_v55 }
 0x161   :  { %2886 = vrot.lane.b32.xlu0 %v3404_v27, %s3100_s30  ;;  %2891 = vrot.lane.b32.xlu1 %v3440_v53, %s3100_s30 }
 0x162   :  { %2521 = vmatpush3.msk.msra.mxu0 %vm4670_vm8, %v3101_v31  ;;  %vm4682_vm8 = vnez %v4642_v54 }
 0x163   :  { %2522 = vmatprep.subr.msk.mxu0 %vm4672_vm10, %v3101_v31  ;;  %vm4686_vm10 = vnez %v4685_v63  ;;  %v214_v63 = vmul.f32 0.35355338, %v3539_v20 }
 0x164   :  { %2523 = vmatpush3.msk.msra.mxu0 %vm4673_vm12, %v3101_v31  ;;  %vm4687_vm12 = vmmov %vm4663_vm1 }
 0x165   :  { %2896 = vrot.lane.b32.xlu0 %v3462_v17, %s3100_s30  ;;  %2901 = vrot.lane.b32.xlu1 %v3484_v49, %s3100_s30 }
 0x169   :  { %2906 = vrot.lane.b32.xlu0 %v3512_v34, %s3100_s30 }
 0x16d   :  { %2911 = vrot.lane.b32.xlu0 %v3517_v46, %s3100_s30 }
 0x17f   :  { %v764_v35 = vpop.permute.xlu0 %763  ;;  %v732_v43 = vpop.permute.xlu1 %731 }
 0x180   :  { %2458 = vmatprep.subr.msk.mxu1 %vm4662_vm0, %v764_v35  ;;  %vm4674_vm0 = vnez %v4624_v59 }
 0x181   :  { %2459 = vmatpush3.xpose.msk.msra.mxu1 %vm4663_vm1, %v732_v43  ;;  %2524 = vmatprep.subr.msk.mxu0 %vm4674_vm0, %v3101_v31  ;;  %vm4690_vm0 = vmmov %vm4663_vm1  ;;  %v212_v43 = vmul.f32 0.35355338, %v3551_v5 }
 0x182   :  { %2525 = vmatpush3.msk.msra.mxu0 %vm4675_vm13, %v3101_v31  ;;  %vm4695_vm13 = vmmov %vm4690_vm0 }
 0x183   :  { %v762_v21 = vpop.permute.xlu0 %761  ;;  %v730_v22 = vpop.permute.xlu1 %729  ;;  %2526 = vmatprep.subr.msk.mxu0 %vm4677_vm3, %v3101_v31  ;;  %vm4698_vm3 = vmmov %vm4690_vm0 }
 0x184   :  { %2460 = vmatprep.subr.msk.mxu1 %vm4664_vm2, %v762_v21  ;;  %vm4676_vm2 = vmmov %vm4663_vm1 }
 0x185   :  { %2461 = vmatpush3.xpose.msk.msra.mxu1 %vm4666_vm4, %v730_v22  ;;  %vm4678_vm4 = vnez %v4627_v3 }
 0x186   :  { %2527 = vmatpush3.msk.msra.mxu0 %vm4678_vm4, %v3101_v31  ;;  %vm4699_vm4 = vmmov %vm4690_vm0 }
 0x187   :  { %v760_v23 = vpop.permute.xlu0 %759  ;;  %v728_v29 = vpop.permute.xlu1 %727  ;;  %2528 = vmatprep.subr.msk.mxu0 %vm3419_vm14, %v3101_v31  ;;  %vm4689_vm14 = vnez %v4688_v6 }
 0x188   :  { %2462 = vmatprep.subr.msk.mxu1 %vm4669_vm7, %v760_v23  ;;  %2529 = vmatpush3.msk.msra.mxu0 %vm4680_vm6, %v3101_v31  ;;  %vm4681_vm7 = vmmov %vm4663_vm1 }
 0x189   :  { %2463 = vmatpush3.xpose.msk.msra.mxu1 %vm4671_vm9, %v728_v29  ;;  %2530 = vmatprep.subr.msk.mxu0 %vm4682_vm8, %v3101_v31  ;;  %vm4684_vm9 = vnez %v4683_v56  ;;  %vm4702_vm6 = vmmov %vm4690_vm0 }
 0x18a   :  { %2531 = vmatpush3.msk.msra.mxu0 %vm4684_vm9, %v3101_v31  ;;  %vm4705_vm8 = vmmov %vm4690_vm0 }
 0x18b   :  { %v758_v33 = vpop.permute.xlu0 %757  ;;  %v726_v36 = vpop.permute.xlu1 %725  ;;  %2532 = vmatprep.subr.msk.mxu0 %vm4686_vm10, %v3101_v31  ;;  %vm4706_vm9 = vmmov %vm4690_vm0 }
 0x18c   :  { %2464 = vmatprep.subr.msk.mxu1 %vm4663_vm1, %v758_v33  ;;  %2533 = vmatpush3.msk.msra.mxu0 %vm4689_vm14, %v3101_v31  ;;  %vm4693_vm1 = vnez %v4692_v9  ;;  %vm4707_vm10 = vmmov %vm4690_vm0 }
 0x18d   :  { %2465 = vmatpush3.xpose.msk.msra.mxu1 %vm4676_vm2, %v726_v36  ;;  %2534 = vmatprep.subr.msk.mxu0 %vm3490_vm11, %v3101_v31  ;;  %vm4697_vm2 = vnez %v4696_v41  ;;  %vm4700_vm11 = vmmov %vm4690_vm0  ;;  %v213_v36 = vmul.f32 0.35355338, %v3545_v32 }
 0x18e   :  { %2535 = vmatpush3.msk.msra.mxu0 %vm4693_vm1, %v3101_v31  ;;  %vm4709_vm14 = vmmov %vm4690_vm0 }
 0x18f   :  { %v756_v40 = vpop.permute.xlu0 %755  ;;  %v724_v48 = vpop.permute.xlu1 %723  ;;  %2536 = vmatprep.subr.msk.mxu0 %vm3505_vm15, %v3101_v31  ;;  %vm4703_vm15 = vmmov %vm4690_vm0 }
 0x190   :  { %2466 = vmatprep.subr.msk.mxu1 %vm4679_vm5, %v756_v40  ;;  %2537 = vmatpush3.msk.msra.mxu0 %vm4697_vm2, %v3101_v31  ;;  %vm4701_vm5 = vmmov %vm4690_vm0 }
 0x191   :  { %2467 = vmatpush3.xpose.msk.msra.mxu1 %vm4681_vm7, %v724_v48  ;;  %vm4704_vm7 = vmmov %vm4690_vm0 }
 0x192   :  { %vm4710_vm1 = vmmov %vm4690_vm0 }
 0x193   :  { %v754_v57 = vpop.permute.xlu0 %753  ;;  %v722_v61 = vpop.permute.xlu1 %721  ;;  %vm4712_vm2 = vmmov %vm4690_vm0 }
 0x194   :  { %2468 = vmatprep.subr.msk.mxu1 %vm4687_vm12, %v754_v57  ;;  %vm4708_vm12 = vmmov %vm4690_vm0 }
 0x195   :  { %2469 = vmatpush3.xpose.msk.msra.mxu1 %vm4690_vm0, %v722_v61 }
 0x197   :  { %v752_v11 = vpop.permute.xlu0 %751  ;;  %v720_v13 = vpop.permute.xlu1 %719 }
 0x198   :  { %2470 = vmatprep.subr.msk.mxu1 %vm4695_vm13, %v752_v11  ;;  %vm4711_vm13 = vmmov %vm4690_vm0 }
 0x199   :  { %2471 = vmatpush3.xpose.msk.msra.mxu1 %vm4698_vm3, %v720_v13  ;;  %vm4713_vm3 = vmmov %vm4690_vm0 }
 0x19b   :  { %v750_v42 = vpop.permute.xlu0 %749  ;;  %v718_v50 = vpop.permute.xlu1 %717 }
 0x19c   :  { %2472 = vmatprep.subr.msk.mxu1 %vm4699_vm4, %v750_v42  ;;  %vm4714_vm4 = vmmov %vm4690_vm0 }
 0x19d   :  { %2473 = vmatpush3.xpose.msk.msra.mxu1 %vm4700_vm11, %v718_v50  ;;  %vm4715_vm11 = vmmov %vm4690_vm0 }
 0x19f   :  { %v748_v51 = vpop.permute.xlu0 %747  ;;  %v716_v52 = vpop.permute.xlu1 %715 }
 0x1a0   :  { %2474 = vmatprep.subr.msk.mxu1 %vm4701_vm5, %v748_v51  ;;  %vm4717_vm5 = vmmov %vm4690_vm0 }
 0x1a1   :  { %2475 = vmatpush3.xpose.msk.msra.mxu1 %vm4702_vm6, %v716_v52  ;;  %vm4718_vm6 = vmmov %vm4690_vm0 }
 0x1a3   :  { %v746_v55 = vpop.permute.xlu0 %745  ;;  %v714_v58 = vpop.permute.xlu1 %713 }
 0x1a4   :  { %2476 = vmatprep.subr.msk.mxu1 %vm4703_vm15, %v746_v55  ;;  %vm4719_vm15 = vmmov %vm4690_vm0  ;;  %v216_v55 = vmul.f32 0.35355338, %v3531_v14 }
 0x1a5   :  { %2477 = vmatpush3.xpose.msk.msra.mxu1 %vm4704_vm7, %v714_v58  ;;  %vm4720_vm7 = vmmov %vm4690_vm0 }
 0x1a7   :  { %v744_v59 = vpop.permute.xlu0 %743  ;;  %v712_v3 = vpop.permute.xlu1 %711 }
 0x1a8   :  { %2478 = vmatprep.subr.msk.mxu1 %vm4705_vm8, %v744_v59  ;;  %vm4721_vm8 = vmmov %vm4690_vm0 }
 0x1a9   :  { %2479 = vmatpush3.xpose.msk.msra.mxu1 %vm4706_vm9, %v712_v3  ;;  %vm4722_vm9 = vmmov %vm4690_vm0 }
 0x1ab   :  { %v742_v10 = vpop.permute.xlu0 %741  ;;  %v710_v12 = vpop.permute.xlu1 %709 }
 0x1ac   :  { %2480 = vmatprep.subr.msk.mxu1 %vm4707_vm10, %v742_v10  ;;  %vm4723_vm10 = vmmov %vm4690_vm0 }
 0x1ad   :  { %2481 = vmatpush3.xpose.msk.msra.mxu1 %vm4708_vm12, %v710_v12  ;;  %vm4724_vm12 = vmmov %vm4690_vm0 }
 0x1af   :  { %v740_v27 = vpop.permute.xlu0 %739  ;;  %v708_v37 = vpop.permute.xlu1 %707 }
 0x1b0   :  { %2482 = vmatprep.subr.msk.mxu1 %vm4709_vm14, %v740_v27  ;;  %vm4725_vm14 = vmmov %vm4690_vm0 }
 0x1b1   :  { %2483 = vmatpush3.xpose.msk.msra.mxu1 %vm4690_vm0, %v708_v37 }
 0x1b3   :  { %v738_v38 = vpop.permute.xlu0 %737  ;;  %v706_v53 = vpop.permute.xlu1 %705 }
 0x1b4   :  { %2484 = vmatprep.subr.msk.mxu1 %vm4710_vm1, %v738_v38  ;;  %vm4726_vm1 = vmmov %vm4690_vm0 }
 0x1b5   :  { %2485 = vmatpush3.xpose.msk.msra.mxu1 %vm4711_vm13, %v706_v53  ;;  %vm4727_vm13 = vmmov %vm4690_vm0 }
 0x1b7   :  { %v736_v54 = vpop.permute.xlu0 %735  ;;  %v704_v17 = vpop.permute.xlu1 %703 }
 0x1b8   :  { %2486 = vmatprep.subr.msk.mxu1 %vm4712_vm2, %v736_v54  ;;  %vm4728_vm2 = vmmov %vm4690_vm0 }
 0x1b9   :  { %2487 = vmatpush3.xpose.msk.msra.mxu1 %vm4713_vm3, %v704_v17  ;;  %vm4729_vm3 = vmmov %vm4690_vm0 }
 0x1bb   :  { %v734_v49 = vpop.permute.xlu0 %733  ;;  %v702_v34 = vpop.permute.xlu1 %701 }
 0x1bc   :  { %2488 = vmatprep.subr.msk.mxu1 %vm4714_vm4, %v734_v49  ;;  %vm4730_vm4 = vmmov %vm4690_vm0 }
 0x1bd   :  { %2489 = vmatpush3.xpose.msk.msra.mxu1 %vm4715_vm11, %v702_v34 }
 0x1bf   :  { %v2837_v46 = vpop.permute.xlu0 %2836  ;;  %v3737_v39 = vpop.permute.xlu1 %2841 }
 0x1c0   :  { %v2839_v0 = vunpack.i.h.bf16 %v2837_v46  ;;  %v2838_v19 = vunpack.i.l.bf16 %v2837_v46  ;;  %2491 = vmatmul.mubr.msk.f32.vlgmr.msra.gmra.mxu1 %vm4717_vm5, %v4716_v24 }
 0x1c1   :  { %2492 = vmatprep.mubr.msk.f32.mxu1 %vm4718_vm6, %v210_v2 }
 0x1c2   :  { %v652_v15 = vmul.f32 %v2839_v0, %v3531_v14  ;;  %v668_v4 = vmul.f32 %v2838_v19, %v3531_v14 }
 0x1c3   :  { %v2847_v7 = vpop.permute.xlu0 %2846  ;;  %v2852_v62 = vpop.permute.xlu1 %2851 }
 0x1c4   :  { %v2849_v1 = vunpack.i.h.bf16 %v2847_v7  ;;  %v2848_v44 = vunpack.i.l.bf16 %v2847_v7  ;;  %1320 = vrot.lane.b32.xlu0 %v652_v15, %s3100_s30  ;;  %1352 = vrot.lane.b32.xlu1 %v668_v4, %s3100_s30  ;;  %v2854_v47 = vunpack.i.h.bf16 %v2852_v62  ;;  %v2853_v26 = vunpack.i.l.bf16 %v2852_v62 }
 0x1c5   :  { %2493 = vmatmul.mubr.msk.f32.gmra.mxu1 %vm4719_vm15, %v210_v2  ;;  %v2843_v4 = vunpack.i.l.bf16 %v3737_v39 }
 0x1c6   :  { %2494 = vmatprep.mubr.msk.f32.mxu1 %vm4720_vm7, %v211_v16  ;;  %v666_v25 = vmul.f32 %v2848_v44, %v3539_v20  ;;  %v650_v31 = vmul.f32 %v2849_v1, %v3539_v20  ;;  %v649_v23 = vmul.f32 %v2854_v47, %v3545_v32  ;;  %v665_v29 = vmul.f32 %v2853_v26, %v3545_v32 }
 0x1c7   :  { %v2857_v35 = vpop.permute.xlu0 %2856  ;;  %v2862_v33 = vpop.permute.xlu1 %2861  ;;  %v2844_v1 = vunpack.i.h.bf16 %v3737_v39  ;;  %v667_v44 = vmul.f32 %v2843_v4, %v3533_v45 }
 0x1c8   :  { %1348 = vrot.lane.b32.xlu0 %v666_v25, %s3100_s30  ;;  %1316 = vrot.lane.b32.xlu1 %v650_v31, %s3100_s30  ;;  %v2859_v21 = vunpack.i.h.bf16 %v2857_v35  ;;  %v2858_v22 = vunpack.i.l.bf16 %v2857_v35  ;;  %v2864_v40 = vunpack.i.h.bf16 %v2862_v33  ;;  %v2863_v48 = vunpack.i.l.bf16 %v2862_v33  ;;  %v4731_v25 = vld [vmem:[#allocation13_spill] sm:$0xff]  ;;  %v4733_v33 = vld [vmem:[#allocation20_spill] sm:$0xff] }
 0x1c9   :  { %2495 = vmatmul.mubr.msk.f32.gmra.mxu1 %vm4721_vm8, %v211_v16  ;;  %v651_v47 = vmul.f32 %v2844_v1, %v3533_v45  ;;  %v966_v31 = vadd.s32 128, %v4731_v25  ;;  %v3820_v35 = vand.u32 63, %v4731_v25 }
 0x1ca   :  { %2496 = vmatprep.mubr.msk.f32.mxu1 %vm4722_vm9, %v212_v43  ;;  %v648_v56 = vmul.f32 %v2859_v21, %v3551_v5  ;;  %v664_v57 = vmul.f32 %v2858_v22, %v3551_v5  ;;  %v647_v6 = vmul.f32 %v2864_v40, %v3557_v28  ;;  %v663_v8 = vmul.f32 %v2863_v48, %v3557_v28  ;;  %v4732_v21 = vld [vmem:[#allocation12_spill] sm:$0xff] }
 0x1cb   :  { %v2867_v61 = vpop.permute.xlu0 %2866  ;;  %v2872_v13 = vpop.permute.xlu1 %2871  ;;  %v969_v22 = vsub.s32 %v4732_v21, %v3820_v35  ;;  %vm1017_vm5 = vcmp.ne.s32.totalorder %v4732_v21, %v3820_v35 }
 0x1cc   :  { %1314 = vrot.lane.b32.xlu1 %v649_v23, %s3100_s30  ;;  %1346 = vrot.lane.b32.xlu0 %v665_v29, %s3100_s30  ;;  %v2869_v9 = vunpack.i.h.bf16 %v2867_v61  ;;  %v2868_v11 = vunpack.i.l.bf16 %v2867_v61  ;;  %v2874_v42 = vunpack.i.h.bf16 %v2872_v13  ;;  %v2873_v50 = vunpack.i.l.bf16 %v2872_v13 }
 0x1cd   :  { %2497 = vmatmul.mubr.msk.f32.gmra.mxu1 %vm4723_vm10, %v212_v43  ;;  %v3822_v43 = vand.u32 63, %v966_v31  ;;  %vm1019_vm10 = vcmp.ne.s32.totalorder %v4733_v33, %v3820_v35  ;;  %v4754_v31 = vmov 0 }
 0x1ce   :  { %2498 = vmatprep.mubr.msk.f32.mxu1 %vm4724_vm12, %v213_v36  ;;  %v646_v51 = vmul.f32 %v2869_v9, %v3563_v30  ;;  %v662_v52 = vmul.f32 %v2868_v11, %v3563_v30  ;;  %v645_v59 = vmul.f32 %v2874_v42, %v3524_v60  ;;  %v661_v3 = vmul.f32 %v2873_v50, %v3524_v60  ;;  %v4739_v11 = vld [vmem:[#allocation18_spill] sm:$0xff] }
 0x1cf   :  { %v2877_v41 = vpop.permute.xlu0 %2876  ;;  %v2882_v58 = vpop.permute.xlu1 %2881  ;;  %v970_v23 = vsub.s32 %v4732_v21, %v3822_v43  ;;  %v972_v40 = vsub.s32 %v4733_v33, %v3822_v43  ;;  %vm1018_vm15 = vcmp.ne.s32.totalorder %v4732_v21, %v3822_v43  ;;  %v975_v13 = vsub.s32 %v4739_v11, %v3820_v35  ;;  %v4105_v21 = vld [vmem:[#allocation5 + $0x8] sm:$0xff] }
 0x1d0   :  { %1312 = vrot.lane.b32.xlu1 %v648_v56, %s3100_s30  ;;  %1344 = vrot.lane.b32.xlu0 %v664_v57, %s3100_s30  ;;  %v2879_v10 = vunpack.i.h.bf16 %v2877_v41  ;;  %v2878_v12 = vunpack.i.l.bf16 %v2877_v41  ;;  %v2884_v16 = vunpack.i.h.bf16 %v2882_v58  ;;  %v4734_v56 = vld [vmem:[#allocation19_spill] sm:$0xff]  ;;  %v976_v50 = vsub.s32 %v4739_v11, %v3822_v43 }
 0x1d1   :  { %2499 = vmatmul.mubr.msk.f32.gmra.mxu1 %vm4725_vm14, %v213_v36  ;;  %v986_v29 = vand.u32 7, %v970_v23  ;;  %v971_v36 = vsub.s32 %v4733_v33, %v3820_v35  ;;  %v973_v57 = vsub.s32 %v4734_v56, %v3820_v35  ;;  %v988_v61 = vand.u32 7, %v972_v40 }
 0x1d2   :  { %2500 = vmatprep.mubr.msk.f32.mxu1 %vm4690_vm0, %v214_v63  ;;  %v644_v37 = vmul.f32 %v2879_v10, %v3531_v14  ;;  %v660_v38 = vmul.f32 %v2878_v12, %v3531_v14  ;;  %vm1020_vm14 = vcmp.ne.s32.totalorder %v4733_v33, %v3822_v43  ;;  %v4744_v12 = vld [vmem:[#allocation17_spill] sm:$0xff]  ;;  %v4758_v40 = vmov 0 }
 0x1d3   :  { %v2887_v27 = vpop.permute.xlu0 %2886  ;;  %v2892_v17 = vpop.permute.xlu1 %2891  ;;  %vm1002_vm6 = vcmp.eq.s32.totalorder %v986_v29, 0  ;;  %v987_v48 = vand.u32 7, %v971_v36  ;;  %vm1004_vm12 = vcmp.eq.s32.totalorder %v988_v61, 0 }
 0x1d4   :  { %1310 = vrot.lane.b32.xlu1 %v647_v6, %s3100_s30  ;;  %1342 = vrot.lane.b32.xlu0 %v663_v8, %s3100_s30  ;;  %v2889_v53 = vunpack.i.h.bf16 %v2887_v27  ;;  %v2888_v54 = vunpack.i.l.bf16 %v2887_v27  ;;  %v2894_v46 = vunpack.i.h.bf16 %v2892_v17  ;;  %v2893_v2 = vunpack.i.l.bf16 %v2892_v17  ;;  %vm3846_vm8 = vmand %vm1002_vm6, %vm1018_vm15 }
 0x1d5   :  { %2501 = vmatmul.mubr.msk.f32.gmra.mxu1 %vm4726_vm1, %v214_v63  ;;  %v974_v63 = vsub.s32 %v4734_v56, %v3822_v43  ;;  %vm1003_vm9 = vcmp.eq.s32.totalorder %v987_v48, 0  ;;  %vm3872_vm1 = vmand %vm1004_vm12, %vm1020_vm14  ;;  %v977_v27 = vsub.s32 %v4744_v12, %v3820_v35  ;;  %vm1023_vm15 = vcmp.ne.s32.totalorder %v4739_v11, %v3820_v35 }
 0x1d6   :  { %2502 = vmatprep.mubr.msk.f32.mxu1 %vm4727_vm13, %v215_v18  ;;  %v642_v49 = vmul.f32 %v2889_v53, %v3539_v20  ;;  %v658_v34 = vmul.f32 %v2888_v54, %v3539_v20  ;;  %v641_v14 = vmul.f32 %v2894_v46, %v3545_v32  ;;  %v657_v19 = vmul.f32 %v2893_v2, %v3545_v32  ;;  %vm3866_vm0 = vmand %vm1003_vm9, %vm1019_vm10 }
 0x1d7   :  { %v2897_v0 = vpop.permute.xlu0 %2896  ;;  %v2883_v20 = vunpack.i.l.bf16 %v2882_v58  ;;  %v3816_v26 = vpop.permute.xlu1 %2901  ;;  %v990_v42 = vand.u32 7, %v974_v63  ;;  %vm1024_vm10 = vcmp.ne.s32.totalorder %v4739_v11, %v3822_v43 }
 0x1d8   :  { %1308 = vrot.lane.b32.xlu1 %v646_v51, %s3100_s30  ;;  %1340 = vrot.lane.b32.xlu0 %v662_v52, %s3100_s30  ;;  %v2899_v24 = vunpack.i.h.bf16 %v2897_v0  ;;  %v2898_v15 = vunpack.i.l.bf16 %v2897_v0  ;;  %v993_v0 = vand.u32 7, %v977_v27 }
 0x1d9   :  { %2503 = vmatmul.mubr.msk.f32.gmra.mxu1 %vm4728_vm2, %v215_v18  ;;  %v659_v32 = vmul.f32 %v2883_v20, %v3533_v45  ;;  %v989_v18 = vand.u32 7, %v973_v57  ;;  %vm1021_vm2 = vcmp.ne.s32.totalorder %v4734_v56, %v3820_v35  ;;  %v4760_v57 = vmov 0 }
 0x1da   :  { %2504 = vmatprep.mubr.msk.f32.mxu1 %vm4729_vm3, %v216_v55  ;;  %v640_v7 = vmul.f32 %v2899_v24, %v3551_v5  ;;  %v656_v62 = vmul.f32 %v2898_v15, %v3551_v5  ;;  %v643_v5 = vmul.f32 %v2884_v16, %v3533_v45  ;;  %v985_v45 = vand.u32 7, %v969_v22 }
 0x1db   :  { %vm1005_vm13 = vcmp.eq.s32.totalorder %v989_v18, 0  ;;  %vm1006_vm3 = vcmp.eq.s32.totalorder %v990_v42, 0  ;;  %v2904_v18 = vunpack.i.h.bf16 %v3816_v26 }
 0x1dc   :  { %1306 = vrot.lane.b32.xlu1 %v645_v59, %s3100_s30  ;;  %1338 = vrot.lane.b32.xlu0 %v661_v3, %s3100_s30  ;;  %vm1001_vm11 = vcmp.eq.s32.totalorder %v985_v45, 0  ;;  %v991_v59 = vand.u32 7, %v975_v13 }
 0x1dd   :  { %2505 = vmatmul.mubr.msk.f32.gmra.mxu1 %vm4730_vm4, %v216_v55  ;;  %vm3840_vm7 = vmand %vm1001_vm11, %vm1017_vm5  ;;  %vm1022_vm4 = vcmp.ne.s32.totalorder %v4734_v56, %v3822_v43  ;;  %v639_v42 = vmul.f32 %v2904_v18, %v3557_v28 }
 0x1de   :  { %vm3892_vm11 = vmand %vm1005_vm13, %vm1021_vm2  ;;  %vm1007_vm5 = vcmp.eq.s32.totalorder %v991_v59, 0  ;;  %vm1009_vm13 = vcmp.eq.s32.totalorder %v993_v0, 0  ;;  %vm1025_vm2 = vcmp.ne.s32.totalorder %v4744_v12, %v3820_v35 }
 0x1df   :  { %vm3898_vm6 = vmand %vm1006_vm3, %vm1022_vm4  ;;  %vm1026_vm4 = vcmp.ne.s32.totalorder %v4744_v12, %v3822_v43 }
 0x1e0   :  { %1304 = vrot.lane.b32.xlu1 %v644_v37, %s3100_s30  ;;  %1336 = vrot.lane.b32.xlu0 %v660_v38, %s3100_s30  ;;  %v992_v37 = vand.u32 7, %v976_v50  ;;  %v978_v38 = vsub.s32 %v4744_v12, %v3822_v43  ;;  %vm3919_vm12 = vmand %vm1007_vm5, %vm1023_vm15  ;;  %v2903_v50 = vunpack.i.l.bf16 %v3816_v26 }
 0x1e1   :  { %vm3941_vm5 = vmand %vm1009_vm13, %vm1025_vm2 }
 0x1e2   :  { %vm1008_vm9 = vcmp.eq.s32.totalorder %v992_v37, 0  ;;  %v994_v24 = vand.u32 7, %v978_v38  ;;  %v4755_v31 = vsel %vm3941_vm5, 4294967295, %v4754_v31  ;;  %v4763_v37 = vld [vmem:[#allocation14_spill] sm:$0xff] }
 0x1e3   :  { %vm3925_vm14 = vmand %vm1008_vm9, %vm1024_vm10  ;;  %v984_v38 = vsub.s32 %v4763_v37, %v3822_v43  ;;  %v983_v26 = vsub.s32 %v4763_v37, %v3820_v35 }
 0x1e4   :  { %1300 = vrot.lane.b32.xlu1 %v642_v49, %s3100_s30  ;;  %1332 = vrot.lane.b32.xlu0 %v658_v34, %s3100_s30  ;;  %v4745_v49 = vmov 0  ;;  %vm1010_vm3 = vcmp.eq.s32.totalorder %v994_v24, 0 }
 0x1e5   :  { %v4746_v49 = vsel %vm3892_vm11, 4294967295, %v4745_v49  ;;  %vm3947_vm15 = vmand %vm1010_vm3, %vm1026_vm4  ;;  %v999_v0 = vand.u32 7, %v983_v26 }
 0x1e8   :  { %1298 = vrot.lane.b32.xlu1 %v641_v14, %s3100_s30  ;;  %1330 = vrot.lane.b32.xlu0 %v657_v19, %s3100_s30  ;;  %v4749_v14 = vld [vmem:[#allocation16_spill] sm:$0xff] }
 0x1e9   :  { %v979_v19 = vsub.s32 %v4749_v14, %v3820_v35  ;;  %v980_v15 = vsub.s32 %v4749_v14, %v3822_v43  ;;  %vm1027_vm10 = vcmp.ne.s32.totalorder %v4749_v14, %v3820_v35 }
 0x1eb   :  { %v995_v16 = vand.u32 7, %v979_v19  ;;  %v4764_v19 = vmov 0 }
 0x1ec   :  { %1296 = vrot.lane.b32.xlu1 %v640_v7, %s3100_s30  ;;  %1328 = vrot.lane.b32.xlu0 %v656_v62, %s3100_s30  ;;  %v4750_v62 = vmov 0 }
 0x1ed   :  { %v4751_v62 = vsel %vm3919_vm12, 4294967295, %v4750_v62  ;;  %vm1011_vm9 = vcmp.eq.s32.totalorder %v995_v16, 0 }
 0x1ee   :  { %vm3963_vm13 = vmand %vm1011_vm9, %vm1027_vm10 }
 0x1ef   :  { %v4759_v40 = vsel %vm3963_vm13, 4294967295, %v4758_v40 }
 0x1f0   :  { %1334 = vrot.lane.b32.xlu0 %v659_v32, %s3100_s30  ;;  %1350 = vrot.lane.b32.xlu1 %v667_v44, %s3100_s30 }
 0x1f4   :  { %1318 = vrot.lane.b32.xlu1 %v651_v47, %s3100_s30  ;;  %v996_v47 = vand.u32 7, %v980_v15  ;;  %v4767_v15 = vmov 0 }
 0x1f8   :  { %1302 = vrot.lane.b32.xlu1 %v643_v5, %s3100_s30 }
 0x236   :  { %v1353_v39 = vpop.permute.xlu1 %1352 }
 0x237   :  { %2562 = vmatprep.subr.mxu0 %v1353_v39 }
 0x280   :  { %v3844_v8 = vpop.f32.mrf.mxu1 }
 0x281   :  { %v1049_v51 = vsel %vm3840_vm7, %v3844_v8, -1e+30 }
 0x282   :  { %v3854_v41 = vpop.f32.mrf.mxu1 }
 0x283   :  { %v1050_v52 = vsel %vm3846_vm8, %v3854_v41, -1e+30 }
 0x284   :  { %v1065_v58 = vmax.f32 %v1049_v51, %v1050_v52  ;;  %v655_v51 = vmul.f32 %v2903_v50, %v3557_v28  ;;  %v4762_v52 = vld [vmem:[#allocation15_spill] sm:$0xff]  ;;  %v1000_v28 = vand.u32 7, %v984_v38 }
 0x285   :  { %v3870_v3 = vpop.f32.mrf.mxu1  ;;  %v981_v59 = vsub.s32 %v4762_v52, %v3820_v35  ;;  %vm1029_vm4 = vcmp.ne.s32.totalorder %v4762_v52, %v3820_v35 }
 0x286   :  { %1066 = vmax.xlane.f32.xlu1 %v1065_v58  ;;  %v1051_v54 = vsel %vm3866_vm0, %v3870_v3, -1e+30  ;;  %v982_v58 = vsub.s32 %v4762_v52, %v3822_v43  ;;  %vm1016_vm10 = vcmp.eq.s32.totalorder %v1000_v28, 0 }
 0x287   :  { %v3884_v53 = vpop.f32.mrf.mxu1 }
 0x288   :  { %v1052_v17 = vsel %vm3872_vm1, %v3884_v53, -1e+30  ;;  %v998_v27 = vand.u32 7, %v982_v58 }
 0x289   :  { %v3896_v34 = vpop.f32.mrf.mxu1  ;;  %v1068_v46 = vmax.f32 %v1051_v54, %v1052_v17  ;;  %v997_v54 = vand.u32 7, %v981_v59 }
 0x28a   :  { %v1053_v20 = vsel %vm3892_vm11, %v3896_v34, -1e+30  ;;  %vm1028_vm11 = vcmp.ne.s32.totalorder %v4749_v14, %v3822_v43  ;;  %v2907_v14 = vpop.permute.xlu0 %2906 }
 0x28b   :  { %1069 = vmax.xlane.f32.xlu0 %v1068_v46  ;;  %v3910_v4 = vpop.f32.mrf.mxu1  ;;  %v4001_v46 = vpop.permute.xlu1 %1316  ;;  %vm1013_vm3 = vcmp.eq.s32.totalorder %v997_v54, 0  ;;  %v2908_v58 = vunpack.i.l.bf16 %v2907_v14 }
 0x28c   :  { %v1054_v7 = vsel %vm3898_vm6, %v3910_v4, -1e+30 }
 0x28d   :  { %v3923_v1 = vpop.f32.mrf.mxu1  ;;  %v1071_v32 = vmax.f32 %v1053_v20, %v1054_v7 }
 0x28e   :  { %v1055_v39 = vsel %vm3919_vm12, %v3923_v1, -1e+30  ;;  %vm1012_vm12 = vcmp.eq.s32.totalorder %v996_v47, 0  ;;  %v2912_v47 = vpop.permute.xlu0 %2911 }
 0x28f   :  { %1072 = vmax.xlane.f32.xlu1 %v1071_v32  ;;  %v3933_v5 = vpop.f32.mrf.mxu1  ;;  %vm3969_vm2 = vmand %vm1012_vm12, %vm1028_vm11  ;;  %vm1014_vm11 = vcmp.eq.s32.totalorder %v998_v27, 0  ;;  %vm1030_vm12 = vcmp.ne.s32.totalorder %v4762_v52, %v3822_v43  ;;  %v4771_v32 = vmov 0  ;;  %v4028_v16 = vpop.permute.xlu1 %1314  ;;  %v2914_v50 = vunpack.i.h.bf16 %v2912_v47 }
 0x290   :  { %v1056_v25 = vsel %vm3925_vm14, %v3933_v5, -1e+30  ;;  %v4761_v57 = vsel %vm3969_vm2, 4294967295, %v4760_v57  ;;  %vm4005_vm9 = vmand %vm1014_vm11, %vm1030_vm12  ;;  %vm1031_vm11 = vcmp.ne.s32.totalorder %v4763_v37, %v3820_v35  ;;  %v2913_v38 = vunpack.i.l.bf16 %v2912_v47 }
 0x291   :  { %v3945_v22 = vpop.f32.mrf.mxu1  ;;  %v1074_v23 = vmax.f32 %v1055_v39, %v1056_v25  ;;  %v4765_v19 = vsel %vm4005_vm9, 4294967295, %v4764_v19  ;;  %v4774_v25 = vmov 0  ;;  %v637_v52 = vmul.f32 %v2914_v50, %v3524_v60  ;;  %v4093_v50 = vld [vmem:[#allocation5 + $0x28] sm:$0xff] }
 0x292   :  { %v1057_v33 = vsel %vm3941_vm5, %v3945_v22, -1e+30  ;;  %4766 = vst [vmem:[#allocation21_spill] sm:$0xff] %v4765_v19  ;;  %vm1015_vm5 = vcmp.eq.s32.totalorder %v999_v0, 0  ;;  %v653_v28 = vmul.f32 %v2913_v38, %v3524_v60  ;;  %4778 = vst [vmem:[#allocation26_spill] sm:$0xff] %v4093_v50 }
 0x293   :  { %1075 = vmax.xlane.f32.xlu0 %v1074_v23  ;;  %v3955_v29 = vpop.f32.mrf.mxu1 }
 0x294   :  { %v1058_v36 = vsel %vm3947_vm15, %v3955_v29, -1e+30 }
 0x295   :  { %v3967_v48 = vpop.f32.mrf.mxu1  ;;  %v1077_v56 = vmax.f32 %v1057_v33, %v1058_v36  ;;  %v4043_v33 = vpop.permute.xlu0 %1320 }
 0x296   :  { %v1059_v63 = vsel %vm3963_vm13, %v3967_v48, -1e+30  ;;  %vm1032_vm13 = vcmp.ne.s32.totalorder %v4763_v37, %v3822_v43  ;;  %v654_v37 = vmul.f32 %v2908_v58, %v3563_v30 }
 0x297   :  { %1078 = vmax.xlane.f32.xlu1 %v1077_v56  ;;  %v3973_v61 = vpop.f32.mrf.mxu1  ;;  %vm4024_vm12 = vmand %vm1016_vm10, %vm1032_vm13  ;;  %v4045_v56 = vpop.permute.xlu1 %1312  ;;  %vm4781_vm13 = vnez %v4751_v62  ;;  %vm4783_vm10 = vnez %v4761_v57 }
 0x298   :  { %v1060_v11 = vsel %vm3969_vm2, %v3973_v61, -1e+30  ;;  %vm4013_vm2 = vmand %vm1013_vm3, %vm1029_vm4  ;;  %v4772_v32 = vsel %vm4024_vm12, 4294967295, %v4771_v32  ;;  %vm4782_vm4 = vnez %v4755_v31 }
 0x299   :  { %v1080_v13 = vmax.f32 %v1059_v63, %v1060_v11  ;;  %v3991_v12 = vpop.f32.mrf.mxu1  ;;  %v4768_v15 = vsel %vm4013_vm2, 4294967295, %v4767_v15  ;;  %4773 = vst [vmem:[#allocation25_spill] sm:$0xff] %v4772_v32  ;;  %vm4033_vm3 = vmand %vm1015_vm5, %vm1031_vm11  ;;  %v4047_v63 = vpop.permute.xlu0 %1348  ;;  %vm4780_vm5 = vnez %v4746_v49  ;;  %vm4784_vm11 = vnez %v4759_v40  ;;  %v73_v49 = vld [vmem:[#allocation5 + $0x30] sm:$0xff] }
 0x29a   :  { %4769 = vst [vmem:[#allocation23_spill] sm:$0xff] %v4768_v15  ;;  %v1061_v43 = vsel %vm4013_vm2, %v3991_v12, -1e+30  ;;  %v4775_v25 = vsel %vm4033_vm3, 4294967295, %v4774_v25 }
 0x29b   :  { %1081 = vmax.xlane.f32.xlu0 %v1080_v13  ;;  %v3997_v17 = vpop.f32.mrf.mxu1  ;;  %4776 = vst [vmem:[#allocation24_spill] sm:$0xff] %v4775_v25  ;;  %v4049_v11 = vpop.permute.xlu1 %1310  ;;  %v2909_v13 = vunpack.i.h.bf16 %v2907_v14 }
 0x29c   :  { %v1062_v20 = vsel %vm4005_vm9, %v3997_v17, -1e+30 }
 0x29d   :  { %v4009_v24 = vpop.f32.mrf.mxu1  ;;  %v1083_v39 = vmax.f32 %v1061_v43, %v1062_v20  ;;  %v4051_v18 = vpop.permute.xlu0 %1346 }
 0x29e   :  { %v1063_v23 = vsel %vm4033_vm3, %v4009_v24, -1e+30 }
 0x29f   :  { %v4022_v7 = vpop.f32.mrf.mxu1 }
 0x2a0   :  { %4770 = vst [vmem:[#allocation22_spill] sm:$0xff] %v4022_v7  ;;  %v1064_v35 = vsel %vm4024_vm12, %v4022_v7, -1e+30 }
 0x2a1   :  { %v1086_v36 = vmax.f32 %v1063_v23, %v1064_v35  ;;  %v4058_v59 = vpop.permute.xlu0 %1344 }
 0x2a5   :  { %v4064_v54 = vpop.permute.xlu0 %1342 }
 0x2a8   :  { %1294 = vrot.lane.b32.xlu1 %v639_v42, %s3100_s30  ;;  %v638_v42 = vmul.f32 %v2909_v13, %v3563_v30 }
 0x2a9   :  { %v4071_v0 = vpop.permute.xlu0 %1340 }
 0x2ad   :  { %v4075_v20 = vpop.permute.xlu0 %1338 }
 0x2b1   :  { %1326 = vrot.lane.b32.xlu0 %v655_v51, %s3100_s30  ;;  %v4054_v51 = vpop.permute.xlu1 %1308  ;;  %v4079_v30 = vpop.permute.xlu0 %1336 }
 0x2b5   :  { %v4060_v27 = vpop.permute.xlu1 %1306 }
 0x2b9   :  { %v4067_v26 = vpop.permute.xlu1 %1304 }
 0x2bd   :  { %v4073_v14 = vpop.permute.xlu1 %1300 }
 0x2c1   :  { %v4077_v43 = vpop.permute.xlu1 %1298 }
 0x2c5   :  { %v4081_v47 = vpop.permute.xlu1 %1296 }
 0x2c9   :  { %v1351_v35 = vpop.permute.xlu1 %1350 }
 0x2cc   :  { %1084 = vmax.xlane.f32.xlu1 %v1083_v39  ;;  %v4083_v39 = vpop.permute.xlu0 %1332 }
 0x2cd   :  { %v1319_v60 = vpop.permute.xlu1 %1318 }
 0x2d0   :  { %1087 = vmax.xlane.f32.xlu0 %v1086_v36  ;;  %v4085_v23 = vpop.permute.xlu0 %1330 }
 0x2d1   :  { %v4089_v13 = vpop.permute.xlu1 %1302 }
 0x2d4   :  { %v4087_v36 = vpop.permute.xlu0 %1328 }
 0x2d8   :  { %v4099_v58 = vpop.permute.xlu0 %1334 }
 0x2dd   :  { %1292 = vrot.lane.b32.xlu1 %v638_v42, %s3100_s30  ;;  %v4091_v42 = vld [vmem:[#allocation5 + $0x38] sm:$0xff] }
 0x2de   :  { %4777 = vst [vmem:[#allocation27_spill] sm:$0xff] %v4091_v42 }
 0x2e1   :  { %1290 = vrot.lane.b32.xlu1 %v637_v52, %s3100_s30 }
 0x2e5   :  { %1519 = vrot.lane.b32.xlu1 %v4093_v50, %s3099_s2 }
 0x2e6   :  { %1324 = vrot.lane.b32.xlu0 %v654_v37, %s3100_s30 }
 0x2e9   :  { %1515 = vrot.lane.b32.xlu1 %v4105_v21, %s3099_s2 }
 0x2ea   :  { %1322 = vrot.lane.b32.xlu0 %v653_v28, %s3100_s30  ;;  %v4103_v28 = vld [vmem:[#allocation5 + $0x18] sm:$0xff] }
 0x2eb   :  { %4779 = vst [vmem:[#allocation28_spill] sm:$0xff] %v4103_v28 }
 0x2ed   :  { %1813 = vrot.lane.b32.xlu1 %v73_v49, %s3098_s0 }
 0x2ee   :  { %1521 = vrot.lane.b32.xlu0 %v4091_v42, %s3099_s2 }
 0x2f2   :  { %1517 = vrot.lane.b32.xlu0 %v4103_v28, %s3099_s2 }
 0x30f   :  { %v1067_v52 = vpop.xlane.xlu1 %1066 }
 0x310   :  { %v1089_v37 = vsub.f32 %v3844_v8, %v1067_v52  ;;  %v1090_v38 = vsub.f32 %v3854_v41, %v1067_v52 }
 0x312   :  { %v1105_v25 = vmul.f32 1.442695, %v1089_v37  ;;  %v1107_v32 = vmul.f32 1.442695, %v1090_v38 }
 0x314   :  { %2915 = vpow2.f32 %v1105_v25  ;;  %v1070_v42 = vpop.xlane.xlu0 %1069 }
 0x315   :  { %2917 = vpow2.f32 %v1107_v32  ;;  %v1091_v50 = vsub.f32 %v3870_v3, %v1070_v42  ;;  %v1092_v8 = vsub.f32 %v3884_v53, %v1070_v42 }
 0x317   :  { %v1109_v41 = vmul.f32 1.442695, %v1091_v50  ;;  %v1111_v52 = vmul.f32 1.442695, %v1092_v8 }
 0x318   :  { %v1073_v15 = vpop.xlane.xlu1 %1072 }
 0x319   :  { %2919 = vpow2.f32 %v1109_v41  ;;  %v1093_v37 = vsub.f32 %v3896_v34, %v1073_v15  ;;  %v1094_v38 = vsub.f32 %v3910_v4, %v1073_v15 }
 0x31a   :  { %2921 = vpow2.f32 %v1111_v52 }
 0x31b   :  { %v1113_v28 = vmul.f32 1.442695, %v1093_v37  ;;  %v1115_v19 = vmul.f32 1.442695, %v1094_v38 }
 0x31c   :  { %v1076_v7 = vpop.xlane.xlu0 %1075 }
 0x31d   :  { %2923 = vpow2.f32 %v1113_v28  ;;  %v1095_v25 = vsub.f32 %v3923_v1, %v1076_v7  ;;  %v1096_v32 = vsub.f32 %v3933_v5, %v1076_v7 }
 0x31e   :  { %2925 = vpow2.f32 %v1115_v19 }
 0x31f   :  { %v1117_v3 = vmul.f32 1.442695, %v1095_v25  ;;  %v1119_v53 = vmul.f32 1.442695, %v1096_v32 }
 0x320   :  { %v1079_v42 = vpop.xlane.xlu1 %1078 }
 0x321   :  { %v4117_v50 = vpop.eup %2915  ;;  %2927 = vpow2.f32 %v1117_v3  ;;  %v1097_v34 = vsub.f32 %v3945_v22, %v1079_v42  ;;  %v1098_v4 = vsub.f32 %v3955_v29, %v1079_v42 }
 0x322   :  { %v4121_v15 = vpop.eup %2917  ;;  %2929 = vpow2.f32 %v1119_v53 }
 0x323   :  { %v1121_v8 = vmul.f32 1.442695, %v1097_v34  ;;  %v1123_v28 = vmul.f32 1.442695, %v1098_v4  ;;  %2386 = vmatprep.mubr.msk.f32.mxu0 %vm3846_vm8, %v4121_v15 }
 0x324   :  { %2387 = vmatmul.mubr.msk.f32.vlgmr.msra.gmra.mxu0 %vm3840_vm7, %v4117_v50  ;;  %v1082_v1 = vpop.xlane.xlu0 %1081 }
 0x325   :  { %2931 = vpow2.f32 %v1121_v8  ;;  %2563 = vmatpush3.msra.mxu0 %v4043_v33  ;;  %v1099_v5 = vsub.f32 %v3967_v48, %v1082_v1  ;;  %v1100_v22 = vsub.f32 %v3973_v61, %v1082_v1 }
 0x326   :  { %v4132_v29 = vpop.eup %2919  ;;  %2933 = vpow2.f32 %v1123_v28  ;;  %2564 = vmatprep.subr.mxu0 %v1351_v35 }
 0x327   :  { %v4134_v19 = vpop.eup %2921  ;;  %v1125_v7 = vmul.f32 1.442695, %v1099_v5  ;;  %v1127_v41 = vmul.f32 1.442695, %v1100_v22  ;;  %2565 = vmatpush3.msra.mxu0 %v1319_v60 }
 0x328   :  { %2388 = vmatprep.mubr.msk.f32.mxu0 %vm3872_vm1, %v4134_v19  ;;  %2566 = vmatprep.subr.mxu0 %v4047_v63 }
 0x329   :  { %2935 = vpow2.f32 %v1125_v7  ;;  %2389 = vmatmul.mubr.msk.f32.gmra.mxu0 %vm3866_vm0, %v4132_v29 }
 0x32a   :  { %v4143_v48 = vpop.eup %2923  ;;  %2937 = vpow2.f32 %v1127_v41  ;;  %2567 = vmatpush3.msra.mxu0 %v4001_v46 }
 0x32b   :  { %v4146_v61 = vpop.eup %2925  ;;  %2568 = vmatprep.subr.mxu0 %v4051_v18  ;;  %v1327_v18 = vpop.permute.xlu0 %1326 }
 0x32c   :  { %2569 = vmatpush3.msra.mxu0 %v4028_v16  ;;  %2390 = vmatprep.mubr.msk.f32.mxu0 %vm3898_vm6, %v4146_v61 }
 0x32d   :  { %2570 = vmatprep.subr.mxu0 %v4058_v59  ;;  %2391 = vmatmul.mubr.msk.f32.gmra.mxu0 %vm4780_vm5, %v4143_v48 }
 0x32e   :  { %v4157_v33 = vpop.eup %2927  ;;  %2571 = vmatpush3.msra.mxu0 %v4045_v56 }
 0x32f   :  { %v4160_v46 = vpop.eup %2929  ;;  %2572 = vmatprep.subr.mxu0 %v4064_v54 }
 0x330   :  { %2573 = vmatpush3.msra.mxu0 %v4049_v11  ;;  %2392 = vmatprep.mubr.msk.f32.mxu0 %vm3925_vm14, %v4160_v46 }
 0x331   :  { %2574 = vmatprep.subr.mxu0 %v4071_v0  ;;  %2393 = vmatmul.mubr.msk.f32.gmra.mxu0 %vm4781_vm13, %v4157_v33 }
 0x332   :  { %v4171_v16 = vpop.eup %2931  ;;  %2575 = vmatpush3.msra.mxu0 %v4054_v51  ;;  %v1295_v51 = vpop.permute.xlu1 %1294 }
 0x333   :  { %v2934_v56 = vpop.eup %2933  ;;  %2576 = vmatprep.subr.mxu0 %v4075_v20 }
 0x334   :  { %2577 = vmatpush3.msra.mxu0 %v4060_v27  ;;  %2394 = vmatprep.mubr.msk.f32.mxu0 %vm3947_vm15, %v2934_v56 }
 0x335   :  { %2578 = vmatprep.subr.mxu0 %v4079_v30  ;;  %2395 = vmatmul.mubr.msk.f32.gmra.mxu0 %vm4782_vm4, %v4171_v16 }
 0x336   :  { %v2936_v63 = vpop.eup %2935  ;;  %2579 = vmatpush3.msra.mxu0 %v4067_v26 }
 0x337   :  { %v2938_v11 = vpop.eup %2937  ;;  %2580 = vmatprep.subr.mxu0 %v4099_v58 }
 0x338   :  { %2581 = vmatpush3.msra.mxu0 %v4089_v13  ;;  %2396 = vmatprep.mubr.msk.f32.mxu0 %vm4783_vm10, %v2938_v11 }
 0x339   :  { %2582 = vmatprep.subr.mxu0 %v4083_v39  ;;  %2397 = vmatmul.mubr.msk.f32.gmra.mxu0 %vm4784_vm11, %v2936_v63 }
 0x33a   :  { %2583 = vmatpush3.msra.mxu0 %v4073_v14 }
 0x33b   :  { %2584 = vmatprep.subr.mxu0 %v4085_v23 }
 0x33c   :  { %2585 = vmatpush3.msra.mxu0 %v4077_v43  ;;  %v4785_v43 = vld [vmem:[#allocation22_spill] sm:$0xff] }
 0x33d   :  { %2586 = vmatprep.subr.mxu0 %v4087_v36 }
 0x33e   :  { %2587 = vmatpush3.msra.mxu0 %v4081_v47 }
 0x33f   :  { %2588 = vmatprep.subr.mxu0 %v1327_v18 }
 0x340   :  { %2589 = vmatpush3.msra.mxu0 %v1295_v51 }
 0x355   :  { %v1085_v59 = vpop.xlane.xlu1 %1084 }
 0x356   :  { %v1101_v27 = vsub.f32 %v3991_v12, %v1085_v59  ;;  %v1102_v54 = vsub.f32 %v3997_v17, %v1085_v59 }
 0x358   :  { %v1129_v26 = vmul.f32 1.442695, %v1101_v27  ;;  %v1131_v0 = vmul.f32 1.442695, %v1102_v54 }
 0x359   :  { %v1088_v14 = vpop.xlane.xlu0 %1087  ;;  %v1293_v39 = vpop.permute.xlu1 %1292 }
 0x35a   :  { %2939 = vpow2.f32 %v1129_v26  ;;  %v1103_v20 = vsub.f32 %v4009_v24, %v1088_v14  ;;  %v1104_v30 = vsub.f32 %v4785_v43, %v1088_v14 }
 0x35b   :  { %2941 = vpow2.f32 %v1131_v0 }
 0x35c   :  { %v1133_v35 = vmul.f32 1.442695, %v1103_v20  ;;  %v1135_v47 = vmul.f32 1.442695, %v1104_v30 }
 0x35d   :  { %v1325_v23 = vpop.permute.xlu0 %1324  ;;  %v1291_v60 = vpop.permute.xlu1 %1290 }
 0x35e   :  { %2943 = vpow2.f32 %v1133_v35  ;;  %2590 = vmatprep.subr.mxu0 %v1325_v23 }
 0x35f   :  { %2945 = vpow2.f32 %v1135_v47  ;;  %2591 = vmatpush3.msra.mxu0 %v1293_v39 }
 0x361   :  { %v1323_v12 = vpop.permute.xlu0 %1322  ;;  %v1520_v9 = vpop.permute.xlu1 %1519 }
 0x362   :  { %2592 = vmatprep.subr.mxu0 %v1323_v12 }
 0x363   :  { %2593 = vmatpush3.msra.mxu0 %v1291_v60 }
 0x365   :  { %v1522_v6 = vpop.permute.xlu0 %1521  ;;  %v1516_v10 = vpop.permute.xlu1 %1515 }
 0x366   :  { %2674 = vmatprep.subr.mxu1 %v1522_v6 }
 0x367   :  { %v2940_v17 = vpop.eup %2939  ;;  %2675 = vmatpush3.msra.mxu1 %v1522_v6 }
 0x368   :  { %v2942_v36 = vpop.eup %2941  ;;  %2676 = vmatprep.subr.mxu1 %v1520_v9 }
 0x369   :  { %2398 = vmatprep.mubr.msk.f32.mxu0 %vm4005_vm9, %v2942_v36  ;;  %2677 = vmatpush3.msra.mxu1 %v1520_v9  ;;  %v1518_v55 = vpop.permute.xlu0 %1517 }
 0x36a   :  { %2399 = vmatmul.mubr.msk.f32.gmra.mxu0 %vm4013_vm2, %v2940_v17  ;;  %2678 = vmatprep.subr.mxu1 %v1518_v55 }
 0x36b   :  { %v2944_v58 = vpop.eup %2943  ;;  %2679 = vmatpush3.msra.mxu1 %v1518_v55 }
 0x36c   :  { %v2946_v52 = vpop.eup %2945  ;;  %2680 = vmatprep.subr.mxu1 %v1516_v10 }
 0x36d   :  { %2400 = vmatprep.mubr.msk.f32.mxu0 %vm4024_vm12, %v2946_v52  ;;  %2681 = vmatpush3.msra.mxu1 %v1516_v10 }
 0x36e   :  { %2401 = vmatmul.mubr.msk.f32.gmra.mxu0 %vm4033_vm3, %v2944_v58 }
 0x36f   :  { %2402 = vmatprep.mubr.msk.f32.mxu0 %vm3846_vm8, %v4121_v15 }
 0x372   :  { %2403 = vmatmul.mubr.msk.f32.vlgmr.msra.gmra.mxu0 %vm3840_vm7, %v4117_v50  ;;  %vm4790_vm7 = vcmask 261120  }
 0x373   :  { %2404 = vmatprep.mubr.msk.f32.mxu0 %vm3872_vm1, %v4134_v19  ;;  %vm4791_vm8 = vmmov %vm4790_vm7 }
 0x376   :  { %2405 = vmatmul.mubr.msk.f32.gmra.mxu0 %vm3866_vm0, %v4132_v29  ;;  %vm4792_vm0 = vmmov %vm4790_vm7 }
 0x377   :  { %2406 = vmatprep.mubr.msk.f32.mxu0 %vm3898_vm6, %v4146_v61  ;;  %vm4793_vm1 = vmmov %vm4792_vm0 }
 0x378   :  { %vm4794_vm6 = vmmov %vm4792_vm0 }
 0x37a   :  { %2407 = vmatmul.mubr.msk.f32.gmra.mxu0 %vm4780_vm5, %v4143_v48  ;;  %vm4802_vm5 = vmmov %vm4792_vm0 }
 0x37b   :  { %2408 = vmatprep.mubr.msk.f32.mxu0 %vm3925_vm14, %v4160_v46  ;;  %vm4795_vm14 = vmmov %vm4792_vm0 }
 0x37e   :  { %2409 = vmatmul.mubr.msk.f32.gmra.mxu0 %vm4781_vm13, %v4157_v33  ;;  %vm4803_vm13 = vmmov %vm4792_vm0 }
 0x37f   :  { %2410 = vmatprep.mubr.msk.f32.mxu0 %vm3947_vm15, %v2934_v56  ;;  %vm4796_vm15 = vmmov %vm4792_vm0 }
 0x382   :  { %2411 = vmatmul.mubr.msk.f32.gmra.mxu0 %vm4782_vm4, %v4171_v16  ;;  %vm4804_vm4 = vmmov %vm4792_vm0 }
 0x383   :  { %2412 = vmatprep.mubr.msk.f32.mxu0 %vm4783_vm10, %v2938_v11  ;;  %vm4805_vm10 = vmmov %vm4792_vm0 }
 0x386   :  { %2413 = vmatmul.mubr.msk.f32.gmra.mxu0 %vm4784_vm11, %v2936_v63  ;;  %vm4808_vm11 = vmmov %vm4792_vm0 }
 0x387   :  { %2414 = vmatprep.mubr.msk.f32.mxu0 %vm4005_vm9, %v2942_v36  ;;  %vm4799_vm9 = vmmov %vm4792_vm0 }
 0x38a   :  { %2415 = vmatmul.mubr.msk.f32.gmra.mxu0 %vm4013_vm2, %v2940_v17  ;;  %vm4797_vm2 = vmmov %vm4792_vm0 }
 0x38b   :  { %2416 = vmatprep.mubr.msk.f32.mxu0 %vm4024_vm12, %v2946_v52  ;;  %vm4800_vm12 = vmmov %vm4792_vm0 }
 0x38e   :  { %2417 = vmatmul.mubr.msk.f32.gmra.mxu0 %vm4033_vm3, %v2944_v58  ;;  %vm4801_vm3 = vmmov %vm4792_vm0 }
 0x3e4   :  { %v2538_v2 = vpop.f32.mrf.mxu0 }
 0x3e6   :  { %v2539_v62 = vpop.f32.mrf.mxu0 }
 0x3e7   :  { %v2540_v42 = vadd.f32 %v2539_v62, %v2538_v2  ;;  %v4798_v62 = vld [vmem:[#allocation12_spill] sm:$0xff] }
 0x3e9   :  { %v2541_v44 = vpop.f32.mrf.mxu0  ;;  %2947 = vrcp.f32 %v2540_v42  ;;  %v2997_v42 = vld [vmem:[#allocation2] sm:$0xff] }
 0x3eb   :  { %v2542_v31 = vpop.f32.mrf.mxu0 }
 0x3ec   :  { %v2543_v34 = vadd.f32 %v2542_v31, %v2541_v44  ;;  %v1509_v44 = vsub.s32 2, %v4798_v62  ;;  %v4258_v31 = vld [vmem:[#allocation7] sm:$0xff] }
 0x3ed   :  { %v2544_v45 = vpop.f32.mrf.mxu0 }
 0x3ee   :  { %2949 = vrcp.f32 %v2543_v34 }
 0x3ef   :  { %v2545_v40 = vpop.f32.mrf.mxu0 }
 0x3f0   :  { %v2546_v8 = vadd.f32 %v2545_v40, %v2544_v45  ;;  %v1510_v45 = vrot.slane %v4258_v31, %v1509_v44 }
 0x3f1   :  { %v2547_v57 = vpop.f32.mrf.mxu0 }
 0x3f2   :  { %2951 = vrcp.f32 %v2546_v8 }
 0x3f3   :  { %v2548_v25 = vpop.f32.mrf.mxu0 }
 0x3f4   :  { %v2549_v5 = vadd.f32 %v2548_v25, %v2547_v57 }
 0x3f5   :  { %v2550_v32 = vpop.f32.mrf.mxu0 }
 0x3f6   :  { %2953 = vrcp.f32 %v2549_v5  ;;  %v2948_v41 = vpop.eup %2947 }
 0x3f7   :  { %v2551_v3 = vpop.f32.mrf.mxu0 }
 0x3f8   :  { %v2552_v19 = vadd.f32 %v2551_v3, %v2550_v32  ;;  %v2996_v32 = vld [vmem:[#allocation2 + $0x8] sm:$0xff] }
 0x3f9   :  { %v2553_v53 = vpop.f32.mrf.mxu0 }
 0x3fa   :  { %2955 = vrcp.f32 %v2552_v19 }
 0x3fb   :  { %v2554_v50 = vpop.f32.mrf.mxu0  ;;  %v2950_v56 = vpop.eup %2949 }
 0x3fc   :  { %v2555_v46 = vadd.f32 %v2554_v50, %v2553_v53 }
 0x3fe   :  { %2957 = vrcp.f32 %v2555_v46  ;;  %v3000_v46 = vld [vmem:[#allocation2 + $0x28] sm:$0xff] }
 0x3ff   :  { %v2952_v27 = vpop.eup %2951 }
 0x403   :  { %v2954_v43 = vpop.eup %2953 }
 0x407   :  { %v2956_v23 = vpop.eup %2955 }
 0x40b   :  { %v2958_v13 = vpop.eup %2957 }
 0x42a   :  { %v2556_v4 = vpop.f32.mrf.mxu0 }
 0x42c   :  { %v2557_v15 = vpop.f32.mrf.mxu0 }
 0x42d   :  { %v2558_v51 = vadd.f32 %v2557_v15, %v2556_v4 }
 0x42e   :  { %v2559_v28 = vpop.f32.mrf.mxu0 }
 0x42f   :  { %2959 = vrcp.f32 %v2558_v51 }
 0x430   :  { %v2560_v1 = vpop.f32.mrf.mxu0 }
 0x431   :  { %v2561_v14 = vadd.f32 %v2560_v1, %v2559_v28  ;;  %v2998_v1 = vld [vmem:[#allocation2 + $0x18] sm:$0xff] }
 0x432   :  { %v2594_v22 = vpop.f32.mrf.mxu0 }
 0x433   :  { %2961 = vrcp.f32 %v2561_v14  ;;  %v71_v14 = vld [vmem:[#allocation5 + $0x20] sm:$0xff] }
 0x434   :  { %v2595_v29 = vpop.f32.mrf.mxu0 }
 0x435   :  { %v2596_v7 = vadd.f32 %v2595_v29, %v2594_v22  ;;  %v2999_v29 = vld [vmem:[#allocation2 + $0x10] sm:$0xff] }
 0x436   :  { %v2597_v48 = vpop.f32.mrf.mxu0 }
 0x437   :  { %v1499_v61 = vmul.f32 %v2948_v41, %v2596_v7 }
 0x438   :  { %v2598_v33 = vpop.f32.mrf.mxu0 }
 0x439   :  { %v2599_v16 = vadd.f32 %v2598_v33, %v2597_v48  ;;  %2682 = vmatprep.mubr.msk.f32.mxu1 %vm4790_vm7, %v1499_v61  ;;  %vm4810_vm7 = vmmov %vm4792_vm0 }
 0x43a   :  { %v2600_v63 = vpop.f32.mrf.mxu0 }
 0x43b   :  { %v1500_v11 = vmul.f32 %v2950_v56, %v2599_v16 }
 0x43c   :  { %v2601_v18 = vpop.f32.mrf.mxu0  ;;  %v2960_v38 = vpop.eup %2959 }
 0x43d   :  { %v2602_v59 = vadd.f32 %v2601_v18, %v2600_v63  ;;  %2683 = vmatmul.mubr.msk.f32.vlgmr.msra.gmra.mxu1 %vm4791_vm8, %v1500_v11  ;;  %v3001_v63 = vld [vmem:[#allocation2 + $0x20] sm:$0xff]  ;;  %vm4811_vm8 = vmmov %vm4792_vm0 }
 0x43e   :  { %v2603_v54 = vpop.f32.mrf.mxu0 }
 0x43f   :  { %v1501_v26 = vmul.f32 %v2952_v27, %v2602_v59 }
 0x440   :  { %v2604_v0 = vpop.f32.mrf.mxu0  ;;  %v2962_v49 = vpop.eup %2961 }
 0x441   :  { %v2605_v20 = vadd.f32 %v2604_v0, %v2603_v54  ;;  %2685 = vmatprep.mubr.msk.f32.mxu1 %vm4792_vm0, %v1501_v26  ;;  %v3002_v54 = vld [vmem:[#allocation2 + $0x38] sm:$0xff] }
 0x442   :  { %v2606_v30 = vpop.f32.mrf.mxu0 }
 0x443   :  { %v1502_v39 = vmul.f32 %v2954_v43, %v2605_v20  ;;  %v4806_v20 = vld [vmem:[#allocation26_spill] sm:$0xff]  ;;  %v4807_v43 = vld [vmem:[#allocation27_spill] sm:$0xff] }
 0x444   :  { %v2607_v35 = vpop.f32.mrf.mxu0 }
 0x445   :  { %v2608_v47 = vadd.f32 %v2607_v35, %v2606_v30  ;;  %2686 = vmatmul.mubr.msk.f32.gmra.mxu1 %vm4793_vm1, %v1502_v39  ;;  %v69_v30 = vld [vmem:[#allocation5 + $0x10] sm:$0xff]  ;;  %vm4812_vm1 = vmmov %vm4792_vm0 }
 0x446   :  { %v2609_v12 = vpop.f32.mrf.mxu0 }
 0x447   :  { %v1503_v60 = vmul.f32 %v2956_v23, %v2608_v47  ;;  %v3003_v47 = vld [vmem:[#allocation2 + $0x30] sm:$0xff] }
 0x448   :  { %v2610_v17 = vpop.f32.mrf.mxu0 }
 0x449   :  { %v2611_v36 = vadd.f32 %v2610_v17, %v2609_v12  ;;  %2688 = vmatprep.mubr.msk.f32.mxu1 %vm4794_vm6, %v1503_v60  ;;  %v4809_v60 = vld [vmem:[#allocation28_spill] sm:$0xff]  ;;  %v1814_v17 = vpop.permute.xlu1 %1813  ;;  %vm4813_vm6 = vmmov %vm4792_vm0 }
 0x44a   :  { %v2612_v24 = vpop.f32.mrf.mxu0 }
 0x44b   :  { %v1504_v58 = vmul.f32 %v2958_v13, %v2611_v36 }
 0x44c   :  { %v2613_v52 = vpop.f32.mrf.mxu0 }
 0x44d   :  { %v2614_v37 = vadd.f32 %v2613_v52, %v2612_v24  ;;  %2689 = vmatmul.mubr.msk.f32.gmra.mxu1 %vm4795_vm14, %v1504_v58  ;;  %vm4814_vm14 = vmmov %vm4792_vm0 }
 0x44e   :  { %v2615_v6 = vpop.f32.mrf.mxu0 }
 0x44f   :  { %v1505_v9 = vmul.f32 %v2960_v38, %v2614_v37 }
 0x450   :  { %v2616_v55 = vpop.f32.mrf.mxu0 }
 0x451   :  { %v2617_v10 = vadd.f32 %v2616_v55, %v2615_v6  ;;  %2691 = vmatprep.mubr.msk.f32.mxu1 %vm4796_vm15, %v1505_v9  ;;  %vm4815_vm15 = vmmov %vm4792_vm0 }
 0x453   :  { %v1506_v2 = vmul.f32 %v2962_v49, %v2617_v10 }
 0x455   :  { %2692 = vmatmul.mubr.msk.f32.gmra.mxu1 %vm4797_vm2, %v1506_v2  ;;  %vm4816_vm2 = vmmov %vm4792_vm0 }
 0x4fd   :  { %v2684_v40 = vpop.f32.mrf.mxu1 }
 0x4fe   :  { %v1623_v57 = vadd.f32 %v2684_v40, %v1510_v45 }
 0x4ff   :  { %v1617_v25 = vpop.f32.mrf.mxu1 }
 0x500   :  { %v1657_v3 = vadd.f32 %v2996_v32, %v1623_v57  ;;  %v1618_v53 = vadd.f32 %v1617_v25, %v1510_v45 }
 0x502   :  { %v1656_v50 = vadd.f32 %v2997_v42, %v1618_v53  ;;  %v1667_v34 = vsel %vm4799_vm9, %v1657_v3, 0.0  ;;  %vm4817_vm9 = vmmov %vm4792_vm0 }
 0x503   :  { %1668 = vadd.xlane.f32.xlu1 %v1667_v34 }
 0x504   :  { %v1664_v4 = vsel %vm4800_vm12, %v1656_v50, 0.0  ;;  %vm4818_vm12 = vmmov %vm4792_vm0 }
 0x505   :  { %v2687_v15 = vpop.f32.mrf.mxu1  ;;  %1665 = vadd.xlane.f32.xlu0 %v1664_v4 }
 0x506   :  { %v1633_v8 = vadd.f32 %v2687_v15, %v1510_v45 }
 0x507   :  { %v1627_v28 = vpop.f32.mrf.mxu1 }
 0x508   :  { %v1659_v5 = vadd.f32 %v2998_v1, %v1633_v8  ;;  %v1628_v22 = vadd.f32 %v1627_v28, %v1510_v45 }
 0x50a   :  { %v1658_v19 = vadd.f32 %v2999_v29, %v1628_v22  ;;  %v1673_v7 = vsel %vm4801_vm3, %v1659_v5, 0.0  ;;  %vm4819_vm3 = vmmov %vm4792_vm0 }
 0x50b   :  { %1674 = vadd.xlane.f32.xlu0 %v1673_v7 }
 0x50c   :  { %v1670_v61 = vsel %vm4802_vm5, %v1658_v19, 0.0  ;;  %vm4820_vm5 = vmmov %vm4792_vm0 }
 0x50d   :  { %v2690_v41 = vpop.f32.mrf.mxu1 }
 0x50e   :  { %v1643_v48 = vadd.f32 %v2690_v41, %v1510_v45 }
 0x50f   :  { %v1637_v33 = vpop.f32.mrf.mxu1  ;;  %1671 = vadd.xlane.f32.xlu0 %v1670_v61 }
 0x510   :  { %v1661_v16 = vadd.f32 %v3000_v46, %v1643_v48  ;;  %v1638_v56 = vadd.f32 %v1637_v33, %v1510_v45 }
 0x512   :  { %v1660_v11 = vadd.f32 %v3001_v63, %v1638_v56  ;;  %v1679_v18 = vsel %vm4803_vm13, %v1661_v16, 0.0  ;;  %v67_v56 = vld [vmem:[#allocation5] sm:$0xff]  ;;  %vm1974_vm13 = vcmask 523264  }
 0x513   :  { %1680 = vadd.xlane.f32.xlu0 %v1679_v18 }
 0x514   :  { %v1676_v51 = vsel %vm4804_vm4, %v1660_v11, 0.0  ;;  %vm4821_vm4 = vmmov %vm4792_vm0 }
 0x515   :  { %v2693_v59 = vpop.f32.mrf.mxu1  ;;  %1677 = vadd.xlane.f32.xlu1 %v1676_v51 }
 0x516   :  { %v1653_v27 = vadd.f32 %v2693_v59, %v1510_v45 }
 0x517   :  { %v1647_v39 = vpop.f32.mrf.mxu1 }
 0x518   :  { %v1663_v26 = vadd.f32 %v3002_v54, %v1653_v27  ;;  %v1648_v35 = vadd.f32 %v1647_v39, %v1510_v45 }
 0x51a   :  { %v1685_v0 = vsel %vm4805_vm10, %v1663_v26, 0.0  ;;  %v1662_v23 = vadd.f32 %v3003_v47, %v1648_v35  ;;  %v1771_v35 = vsub.s32 4, %v4798_v62  ;;  %v1783_v47 = vsub.s32 5, %v4798_v62  ;;  %vm4822_vm10 = vmmov %vm4792_vm0 }
 0x51b   :  { %1686 = vadd.xlane.f32.xlu0 %v1685_v0 }
 0x51c   :  { %v1682_v12 = vsel %vm4808_vm11, %v1662_v23, 0.0  ;;  %vm4823_vm11 = vmmov %vm4792_vm0 }
 0x526   :  { %1809 = vrot.lane.b32.xlu1 %v71_v14, %s3098_s0 }
 0x52a   :  { %1811 = vrot.lane.b32.xlu1 %v4806_v20, %s3098_s0 }
 0x531   :  { %1815 = vrot.lane.b32.xlu0 %v4807_v43, %s3098_s0 }
 0x535   :  { %1805 = vrot.lane.b32.xlu0 %v69_v30, %s3098_s0 }
 0x54e   :  { %1683 = vadd.xlane.f32.xlu1 %v1682_v12 }
 0x55f   :  { %1807 = vrot.lane.b32.xlu1 %v4809_v60, %s3098_s0 }
 0x58c   :  { %v1669_v36 = vpop.xlane.xlu1 %1668 }
 0x58d   :  { %v1690_v13 = vmul.f32 0.03125, %v1669_v36 }
 0x58e   :  { %v1666_v24 = vpop.xlane.xlu0 %1665 }
 0x58f   :  { %v4277_v58 = vsub.f32 %v1657_v3, %v1690_v13  ;;  %v1689_v52 = vmul.f32 0.03125, %v1666_v24 }
 0x591   :  { %v4279_v37 = vsub.f32 %v1656_v50, %v1689_v52  ;;  %v1706_v38 = vmul.f32 %v4277_v58, %v4277_v58 }
 0x593   :  { %v1716_v6 = vsel %vm4810_vm7, %v1706_v38, 0.0  ;;  %v1705_v9 = vmul.f32 %v4279_v37, %v4279_v37  ;;  %vm4824_vm7 = vmmov %vm4792_vm0 }
 0x594   :  { %1717 = vadd.xlane.f32.xlu0 %v1716_v6  ;;  %v1675_v55 = vpop.xlane.xlu0 %1674 }
 0x595   :  { %v1692_v10 = vmul.f32 0.03125, %v1675_v55  ;;  %v1713_v49 = vsel %vm4811_vm8, %v1705_v9, 0.0  ;;  %vm4825_vm8 = vmmov %vm4792_vm0 }
 0x596   :  { %1714 = vadd.xlane.f32.xlu1 %v1713_v49 }
 0x597   :  { %v4287_v2 = vsub.f32 %v1659_v5, %v1692_v10 }
 0x598   :  { %v1672_v44 = vpop.xlane.xlu0 %1671 }
 0x599   :  { %v1691_v45 = vmul.f32 0.03125, %v1672_v44  ;;  %v1708_v40 = vmul.f32 %v4287_v2, %v4287_v2 }
 0x59b   :  { %v4291_v57 = vsub.f32 %v1658_v19, %v1691_v45  ;;  %v1722_v25 = vsel %vm4792_vm0, %v1708_v40, 0.0 }
 0x59c   :  { %1723 = vadd.xlane.f32.xlu0 %v1722_v25  ;;  %v1681_v32 = vpop.xlane.xlu0 %1680 }
 0x59d   :  { %v1694_v3 = vmul.f32 0.03125, %v1681_v32  ;;  %v1707_v53 = vmul.f32 %v4291_v57, %v4291_v57 }
 0x59e   :  { %v1678_v42 = vpop.xlane.xlu1 %1677 }
 0x59f   :  { %v4296_v50 = vsub.f32 %v1661_v16, %v1694_v3  ;;  %v1693_v34 = vmul.f32 0.03125, %v1678_v42  ;;  %v1719_v4 = vsel %vm4812_vm1, %v1707_v53, 0.0  ;;  %vm4826_vm1 = vmmov %vm4792_vm0 }
 0x5a0   :  { %1720 = vadd.xlane.f32.xlu1 %v1719_v4 }
 0x5a1   :  { %v4299_v15 = vsub.f32 %v1660_v11, %v1693_v34  ;;  %v1710_v8 = vmul.f32 %v4296_v50, %v4296_v50 }
 0x5a2   :  { %v1810_v28 = vpop.permute.xlu1 %1809 }
 0x5a3   :  { %v1728_v1 = vsel %vm4813_vm6, %v1710_v8, 0.0  ;;  %v1709_v5 = vmul.f32 %v4299_v15, %v4299_v15  ;;  %vm4827_vm6 = vmmov %vm4792_vm0 }
 0x5a4   :  { %1729 = vadd.xlane.f32.xlu0 %v1728_v1  ;;  %v1687_v22 = vpop.xlane.xlu0 %1686 }
 0x5a5   :  { %v1696_v29 = vmul.f32 0.03125, %v1687_v22  ;;  %v1725_v19 = vsel %vm4814_vm14, %v1709_v5, 0.0  ;;  %vm4828_vm14 = vmmov %vm4792_vm0 }
 0x5a6   :  { %1726 = vadd.xlane.f32.xlu1 %v1725_v19  ;;  %v1812_v41 = vpop.permute.xlu1 %1811 }
 0x5a7   :  { %v4307_v7 = vsub.f32 %v1663_v26, %v1696_v29  ;;  %v1819_v16 = vsel %vm4817_vm9, %v1810_v28, %v1812_v41  ;;  %vm4831_vm9 = vmmov %vm4792_vm0 }
 0x5a8   :  { %v1816_v48 = vpop.permute.xlu0 %1815 }
 0x5a9   :  { %v1820_v61 = vsel %vm4815_vm15, %v1814_v17, %v1816_v48  ;;  %v1712_v33 = vmul.f32 %v4307_v7, %v4307_v7  ;;  %vm4829_vm15 = vmmov %vm4792_vm0 }
 0x5aa   :  { %2694 = vmatprep.subr.mxu0 %v1820_v61 }
 0x5ab   :  { %2695 = vmatpush3.msra.mxu0 %v1820_v61  ;;  %v1734_v46 = vsel %vm4816_vm2, %v1712_v33, 0.0  ;;  %vm4830_vm2 = vmmov %vm4792_vm0 }
 0x5ac   :  { %1735 = vadd.xlane.f32.xlu0 %v1734_v46  ;;  %2696 = vmatprep.subr.mxu0 %v1819_v16  ;;  %v1806_v51 = vpop.permute.xlu0 %1805 }
 0x5ad   :  { %2697 = vmatpush3.msra.mxu0 %v1819_v16 }
 0x5c2   :  { %1801 = vrot.lane.b32.xlu0 %v67_v56, %s3098_s0 }
 0x5c6   :  { %1972 = vrot.lane.b32.xlu0 %v4807_v43, %s3100_s30 }
 0x5ca   :  { %1968 = vrot.lane.b32.xlu0 %v4809_v60, %s3100_s30  ;;  %v4334_v60 = vrot.slane %v4258_v31, %v1771_v35 }
 0x5d7   :  { %v1684_v63 = vpop.xlane.xlu1 %1683 }
 0x5d8   :  { %v1695_v11 = vmul.f32 0.03125, %v1684_v63 }
 0x5da   :  { %v4319_v18 = vsub.f32 %v1662_v23, %v1695_v11 }
 0x5db   :  { %v1808_v59 = vpop.permute.xlu1 %1807 }
 0x5dc   :  { %v1711_v27 = vmul.f32 %v4319_v18, %v4319_v18  ;;  %v1818_v54 = vsel %vm4818_vm12, %v1806_v51, %v1808_v59  ;;  %vm4832_vm12 = vmmov %vm4792_vm0 }
 0x5dd   :  { %2698 = vmatprep.subr.mxu0 %v1818_v54 }
 0x5de   :  { %v1731_v26 = vsel %vm4819_vm3, %v1711_v27, 0.0  ;;  %2699 = vmatpush3.msra.mxu0 %v1818_v54  ;;  %vm4833_vm3 = vmmov %vm4792_vm0 }
 0x5df   :  { %1732 = vadd.xlane.f32.xlu1 %v1731_v26 }
 0x5f0   :  { %1803 = vrot.lane.b32.xlu1 %v4105_v21, %s3098_s0 }
 0x5f4   :  { %1970 = vrot.lane.b32.xlu1 %v4806_v20, %s3100_s30 }
 0x5f8   :  { %1966 = vrot.lane.b32.xlu1 %v4105_v21, %s3100_s30  ;;  %v4339_v21 = vrot.slane %v4258_v31, %v1783_v47 }
 0x61d   :  { %v1718_v30 = vpop.xlane.xlu0 %1717 }
 0x61e   :  { %v1738_v38 = vmul.f32 0.03125, %v1718_v30 }
 0x61f   :  { %v1715_v0 = vpop.xlane.xlu1 %1714 }
 0x620   :  { %v1737_v14 = vmul.f32 0.03125, %v1715_v0  ;;  %v1746_v55 = vadd.f32 1e-05, %v1738_v38 }
 0x622   :  { %v1745_v43 = vadd.f32 1e-05, %v1737_v14 }
 0x624   :  { %2963 = vrsqrt.f32 %v1745_v43 }
 0x625   :  { %v1724_v39 = vpop.xlane.xlu0 %1723  ;;  %2965 = vrsqrt.f32 %v1746_v55 }
 0x626   :  { %v1740_v10 = vmul.f32 0.03125, %v1724_v39 }
 0x628   :  { %v1748_v45 = vadd.f32 1e-05, %v1740_v10 }
 0x62d   :  { %v1730_v12 = vpop.xlane.xlu0 %1729 }
 0x62e   :  { %v1742_v40 = vmul.f32 0.03125, %v1730_v12 }
 0x630   :  { %v1750_v32 = vadd.f32 1e-05, %v1742_v40 }
 0x631   :  { %v2964_v23 = vpop.eup %2963 }
 0x632   :  { %v1761_v20 = vmul.f32 %v2964_v23, %v4279_v37  ;;  %v1721_v37 = vpop.xlane.xlu1 %1720  ;;  %v2966_v53 = vpop.eup %2965 }
 0x633   :  { %v1739_v6 = vmul.f32 0.03125, %v1721_v37  ;;  %v1762_v4 = vmul.f32 %v2966_v53, %v4277_v58 }
 0x634   :  { %v1773_v17 = vmul.f32 %v4334_v60, %v1761_v20 }
 0x635   :  { %v1736_v36 = vpop.xlane.xlu0 %1735  ;;  %v1747_v49 = vadd.f32 1e-05, %v1739_v6  ;;  %v1774_v29 = vmul.f32 %v4334_v60, %v1762_v4 }
 0x636   :  { %v4342_v13 = vadd.f32 %v4339_v21, %v1773_v17  ;;  %v1727_v9 = vpop.xlane.xlu1 %1726  ;;  %v1744_v3 = vmul.f32 0.03125, %v1736_v36 }
 0x637   :  { %v1741_v44 = vmul.f32 0.03125, %v1727_v9  ;;  %2967 = vrsqrt.f32 %v1747_v49 }
 0x638   :  { %2702 = vmatprep.mubr.msk.f32.mxu0 %vm4820_vm5, %v4342_v13  ;;  %2969 = vrsqrt.f32 %v1748_v45  ;;  %v1752_v34 = vadd.f32 1e-05, %v1744_v3  ;;  %vm4834_vm5 = vmmov %vm4792_vm0 }
 0x639   :  { %v1802_v24 = vpop.permute.xlu0 %1801  ;;  %v1749_v25 = vadd.f32 1e-05, %v1741_v44 }
 0x63b   :  { %2971 = vrsqrt.f32 %v1749_v25 }
 0x63c   :  { %2973 = vrsqrt.f32 %v1750_v32 }
 0x63d   :  { %v1973_v52 = vpop.permute.xlu0 %1972  ;;  %2975 = vrsqrt.f32 %v1752_v34  ;;  %v1964_v34 = vsub.s32 3, %v4798_v62 }
 0x63e   :  { %2734 = vmatprep.subr.msk.mxu1 %vm1974_vm13, %v1973_v52 }
 0x63f   :  { %2738 = vmatpush3.xpose.msk.msra.mxu1 %vm1974_vm13, %v1973_v52  ;;  %v1965_v4 = vrot.slane %v4258_v31, %v1964_v34 }
 0x641   :  { %v1969_v11 = vpop.permute.xlu0 %1968 }
 0x644   :  { %v2968_v42 = vpop.eup %2967 }
 0x645   :  { %v2970_v8 = vpop.eup %2969  ;;  %v1763_v28 = vmul.f32 %v2968_v42, %v4291_v57  ;;  %v4356_v57 = vadd.f32 %v4339_v21, %v1774_v29 }
 0x646   :  { %v1764_v19 = vmul.f32 %v2970_v8, %v4287_v2 }
 0x647   :  { %v1775_v61 = vmul.f32 %v4334_v60, %v1763_v28 }
 0x648   :  { %v2972_v1 = vpop.eup %2971  ;;  %v1776_v16 = vmul.f32 %v4334_v60, %v1764_v19 }
 0x649   :  { %v2974_v41 = vpop.eup %2973  ;;  %v1765_v33 = vmul.f32 %v2972_v1, %v4299_v15  ;;  %v4361_v2 = vadd.f32 %v4339_v21, %v1775_v61 }
 0x64a   :  { %v1766_v56 = vmul.f32 %v2974_v41, %v4296_v50  ;;  %v4371_v50 = vadd.f32 %v4339_v21, %v1776_v16  ;;  %v2976_v27 = vpop.eup %2975 }
 0x64b   :  { %v1777_v63 = vmul.f32 %v4334_v60, %v1765_v33  ;;  %v1768_v26 = vmul.f32 %v2976_v27, %v4307_v7 }
 0x64c   :  { %v1778_v51 = vmul.f32 %v4334_v60, %v1766_v56 }
 0x64d   :  { %v4377_v59 = vadd.f32 %v4339_v21, %v1777_v63  ;;  %v1780_v43 = vmul.f32 %v4334_v60, %v1768_v26 }
 0x64e   :  { %v4387_v54 = vadd.f32 %v4339_v21, %v1778_v51 }
 0x64f   :  { %v4402_v35 = vadd.f32 %v4339_v21, %v1780_v43 }
 0x668   :  { %v1733_v5 = vpop.xlane.xlu1 %1732 }
 0x669   :  { %v1743_v22 = vmul.f32 0.03125, %v1733_v5 }
 0x66b   :  { %v1751_v48 = vadd.f32 1e-05, %v1743_v22 }
 0x66c   :  { %v1804_v46 = vpop.permute.xlu1 %1803 }
 0x66d   :  { %2977 = vrsqrt.f32 %v1751_v48  ;;  %v1817_v58 = vsel %vm4821_vm4, %v1802_v24, %v1804_v46  ;;  %vm4836_vm4 = vmmov %vm4792_vm0 }
 0x66e   :  { %2700 = vmatprep.subr.mxu0 %v1817_v58 }
 0x66f   :  { %2701 = vmatpush3.msra.mxu0 %v1817_v58 }
 0x670   :  { %2703 = vmatmul.mubr.msk.f32.vlgmr.msra.gmra.mxu0 %vm4822_vm10, %v4356_v57  ;;  %2714 = vmatprep.subr.msk.mxu0 %vm1974_vm13, %v1973_v52  ;;  %v1971_v15 = vpop.permute.xlu1 %1970  ;;  %vm4837_vm10 = vmmov %vm4792_vm0 }
 0x671   :  { %2705 = vmatprep.mubr.msk.f32.mxu0 %vm4823_vm11, %v4361_v2  ;;  %2715 = vmatpush3.xpose.msk.msra.mxu0 %vm1974_vm13, %v1973_v52  ;;  %vm4838_vm11 = vmmov %vm4792_vm0 }
 0x672   :  { %2716 = vmatprep.subr.msk.mxu0 %vm1974_vm13, %v1971_v15  ;;  %2735 = vmatprep.subr.msk.mxu1 %vm1974_vm13, %v1971_v15 }
 0x673   :  { %2739 = vmatpush3.xpose.msk.msra.mxu1 %vm1974_vm13, %v1971_v15 }
 0x674   :  { %2706 = vmatmul.mubr.msk.f32.gmra.mxu0 %vm4824_vm7, %v4371_v50  ;;  %2736 = vmatprep.subr.msk.mxu1 %vm1974_vm13, %v1969_v11  ;;  %v1967_v7 = vpop.permute.xlu1 %1966  ;;  %vm4839_vm7 = vmmov %vm4792_vm0 }
 0x675   :  { %2708 = vmatprep.mubr.msk.f32.mxu0 %vm4825_vm8, %v4377_v59  ;;  %2717 = vmatpush3.xpose.msk.msra.mxu0 %vm1974_vm13, %v1971_v15  ;;  %vm4840_vm8 = vmmov %vm4792_vm0 }
 0x676   :  { %2718 = vmatprep.subr.msk.mxu0 %vm1974_vm13, %v1969_v11 }
 0x677   :  { %2740 = vmatpush3.xpose.msk.msra.mxu1 %vm1974_vm13, %v1969_v11 }
 0x678   :  { %2709 = vmatmul.mubr.msk.f32.gmra.mxu0 %vm4792_vm0, %v4387_v54  ;;  %2737 = vmatprep.subr.msk.mxu1 %vm1974_vm13, %v1967_v7 }
 0x679   :  { %2719 = vmatpush3.xpose.msk.msra.mxu0 %vm1974_vm13, %v1969_v11 }
 0x67a   :  { %v2978_v0 = vpop.eup %2977  ;;  %2720 = vmatprep.subr.msk.mxu0 %vm1974_vm13, %v1967_v7 }
 0x67b   :  { %v1767_v14 = vmul.f32 %v2978_v0, %v4319_v18  ;;  %2741 = vmatpush3.xpose.msk.msra.mxu1 %vm1974_vm13, %v1967_v7  ;;  %v1795_v18 = vsub.s32 1, %v4798_v62 }
 0x67d   :  { %v1779_v30 = vmul.f32 %v4334_v60, %v1767_v14  ;;  %2721 = vmatpush3.xpose.msk.msra.mxu0 %vm1974_vm13, %v1967_v7  ;;  %v1796_v47 = vrot.slane %v4258_v31, %v1795_v18 }
 0x67f   :  { %v4399_v39 = vadd.f32 %v4339_v21, %v1779_v30 }
 0x681   :  { %2711 = vmatprep.mubr.msk.f32.mxu0 %vm4826_vm1, %v4399_v39  ;;  %vm4841_vm1 = vmmov %vm4792_vm0 }
 0x682   :  { %2712 = vmatmul.mubr.msk.f32.gmra.mxu0 %vm4827_vm6, %v4402_v35  ;;  %vm4842_vm6 = vmmov %vm4792_vm0 }
 0x730   :  { %v2704_v23 = vpop.f32.mrf.mxu0 }
 0x731   :  { %v1921_v12 = vadd.f32 %v2704_v23, %v1796_v47 }
 0x732   :  { %v1915_v60 = vpop.f32.mrf.mxu0 }
 0x733   :  { %v1916_v20 = vadd.f32 %v1915_v60, %v1796_v47  ;;  %v1955_v36 = vmax.f32 %v1921_v12, 0.0 }
 0x734   :  { %v2707_v17 = vpop.f32.mrf.mxu0 }
 0x735   :  { %v1954_v21 = vmax.f32 %v1916_v20, 0.0  ;;  %v1931_v24 = vadd.f32 %v2707_v17, %v1796_v47 }
 0x736   :  { %v1925_v52 = vpop.f32.mrf.mxu0 }
 0x737   :  { %v1926_v37 = vadd.f32 %v1925_v52, %v1796_v47  ;;  %2722 = vmatprep.mubr.msk.f32.mxu0 %vm1974_vm13, %v1954_v21  ;;  %v1957_v9 = vmax.f32 %v1931_v24, 0.0 }
 0x738   :  { %v2710_v38 = vpop.f32.mrf.mxu0  ;;  %2723 = vmatmul.mubr.msk.f32.vlgmr.msra.gmra.mxu0 %vm1974_vm13, %v1955_v36 }
 0x739   :  { %v1956_v6 = vmax.f32 %v1926_v37, 0.0  ;;  %v1941_v55 = vadd.f32 %v2710_v38, %v1796_v47 }
 0x73a   :  { %v1935_v10 = vpop.f32.mrf.mxu0 }
 0x73b   :  { %v1936_v49 = vadd.f32 %v1935_v10, %v1796_v47  ;;  %2725 = vmatprep.mubr.msk.f32.mxu1 %vm1974_vm13, %v1956_v6  ;;  %v1959_v45 = vmax.f32 %v1941_v55, 0.0 }
 0x73c   :  { %2726 = vmatmul.mubr.msk.f32.vlgmr.msra.gmra.mxu1 %vm1974_vm13, %v1957_v9 }
 0x73d   :  { %v1958_v44 = vmax.f32 %v1936_v49, 0.0 }
 0x73f   :  { %2728 = vmatprep.mubr.msk.f32.mxu1 %vm1974_vm13, %v1958_v44 }
 0x740   :  { %2729 = vmatmul.mubr.msk.f32.gmra.mxu1 %vm1974_vm13, %v1959_v45 }
 0x742   :  { %v2713_v40 = vpop.f32.mrf.mxu0 }
 0x743   :  { %v1951_v25 = vadd.f32 %v2713_v40, %v1796_v47 }
 0x744   :  { %v1945_v32 = vpop.f32.mrf.mxu0 }
 0x745   :  { %v1946_v3 = vadd.f32 %v1945_v32, %v1796_v47  ;;  %v1961_v42 = vmax.f32 %v1951_v25, 0.0 }
 0x747   :  { %v1960_v53 = vmax.f32 %v1946_v3, 0.0 }
 0x749   :  { %2731 = vmatprep.mubr.msk.f32.mxu1 %vm1974_vm13, %v1960_v53 }
 0x74a   :  { %2732 = vmatmul.mubr.msk.f32.gmra.mxu1 %vm1974_vm13, %v1961_v42  ;;  %vm4835_vm13 = vmmov %vm4792_vm0 }
 0x7f8   :  { %v2724_v8 = vpop.f32.mrf.mxu0 }
 0x7f9   :  { %v2079_v28 = vadd.f32 %v2724_v8, %v1965_v4 }
 0x7fa   :  { %v2073_v1 = vpop.f32.mrf.mxu0 }
 0x7fb   :  { %v2113_v5 = vadd.f32 %v2079_v28, %v4356_v57  ;;  %v2074_v22 = vadd.f32 %v2073_v1, %v1965_v4 }
 0x7fc   :  { %v2727_v29 = vpop.f32.mrf.mxu1 }
 0x7fd   :  { %v2112_v19 = vadd.f32 %v2074_v22, %v4342_v13  ;;  %v2089_v41 = vadd.f32 %v2727_v29, %v1965_v4  ;;  %v2123_v48 = vsel %vm4828_vm14, %v2113_v5, 0.0  ;;  %vm4843_vm14 = vmmov %vm4792_vm0 }
 0x7fe   :  { %v2083_v61 = vpop.f32.mrf.mxu1  ;;  %2124 = vadd.xlane.f32.xlu1 %v2123_v48 }
 0x7ff   :  { %v2115_v33 = vadd.f32 %v2089_v41, %v4371_v50  ;;  %v2084_v46 = vadd.f32 %v2083_v61, %v1965_v4  ;;  %v2120_v58 = vsel %vm4829_vm15, %v2112_v19, 0.0  ;;  %vm4844_vm15 = vmmov %vm4792_vm0 }
 0x800   :  { %v2730_v16 = vpop.f32.mrf.mxu1  ;;  %2121 = vadd.xlane.f32.xlu0 %v2120_v58 }
 0x801   :  { %v2114_v63 = vadd.f32 %v2084_v46, %v4361_v2  ;;  %v2099_v57 = vadd.f32 %v2730_v16, %v1965_v4  ;;  %v2129_v11 = vsel %vm4830_vm2, %v2115_v33, 0.0  ;;  %vm4845_vm2 = vmmov %vm4792_vm0 }
 0x802   :  { %v2093_v56 = vpop.f32.mrf.mxu1 }
 0x803   :  { %v2094_v15 = vadd.f32 %v2093_v56, %v1965_v4  ;;  %v2117_v51 = vadd.f32 %v2099_v57, %v4387_v54  ;;  %v2126_v50 = vsel %vm4832_vm12, %v2114_v63, 0.0  ;;  %vm4847_vm12 = vmmov %vm4792_vm0 }
 0x804   :  { %2130 = vadd.xlane.f32.xlu0 %v2129_v11 }
 0x805   :  { %v2116_v13 = vadd.f32 %v2094_v15, %v4377_v59  ;;  %v2135_v14 = vsel %vm4833_vm3, %v2117_v51, 0.0  ;;  %vm4848_vm3 = vmmov %vm4792_vm0 }
 0x807   :  { %v2132_v27 = vsel %vm4831_vm9, %v2116_v13, 0.0  ;;  %vm4846_vm9 = vmmov %vm4792_vm0 }
 0x808   :  { %2133 = vadd.xlane.f32.xlu1 %v2132_v27  ;;  %2127 = vadd.xlane.f32.xlu0 %v2126_v50  ;;  %v2226_v27 = vsub.s32 6, %v4798_v62 }
 0x80a   :  { %v2733_v26 = vpop.f32.mrf.mxu1 }
 0x80b   :  { %v2109_v0 = vadd.f32 %v2733_v26, %v1965_v4 }
 0x80c   :  { %v2103_v2 = vpop.f32.mrf.mxu1  ;;  %2136 = vadd.xlane.f32.xlu0 %v2135_v14  ;;  %v2238_v14 = vsub.s32 7, %v4798_v62 }
 0x80d   :  { %v2119_v43 = vadd.f32 %v2109_v0, %v4402_v35  ;;  %v2104_v30 = vadd.f32 %v2103_v2, %v1965_v4 }
 0x80f   :  { %v2118_v7 = vadd.f32 %v2104_v30, %v4399_v39  ;;  %v2141_v59 = vsel %vm4834_vm5, %v2119_v43, 0.0  ;;  %v2227_v30 = vrot.slane %v4258_v31, %v2226_v27  ;;  %vm4849_vm5 = vmmov %vm4792_vm0 }
 0x810   :  { %2142 = vadd.xlane.f32.xlu0 %v2141_v59 }
 0x811   :  { %v2138_v54 = vsel %vm4835_vm13, %v2118_v7, 0.0  ;;  %vm4850_vm13 = vmmov %vm4792_vm0 }
 0x812   :  { %2139 = vadd.xlane.f32.xlu1 %v2138_v54 }
 0x887   :  { %v2125_v18 = vpop.xlane.xlu1 %2124 }
 0x888   :  { %v2145_v47 = vmul.f32 0.03125, %v2125_v18 }
 0x889   :  { %v2122_v23 = vpop.xlane.xlu0 %2121 }
 0x88a   :  { %v4440_v12 = vsub.f32 %v2113_v5, %v2145_v47  ;;  %v2144_v60 = vmul.f32 0.03125, %v2122_v23  ;;  %v2239_v47 = vrot.slane %v4258_v31, %v2238_v14 }
 0x88c   :  { %v4442_v20 = vsub.f32 %v2112_v19, %v2144_v60  ;;  %v2161_v35 = vmul.f32 %v4440_v12, %v4440_v12 }
 0x88d   :  { %v2131_v17 = vpop.xlane.xlu0 %2130 }
 0x88e   :  { %v2147_v21 = vmul.f32 0.03125, %v2131_v17  ;;  %v2171_v39 = vsel %vm4836_vm4, %v2161_v35, 0.0  ;;  %v2160_v36 = vmul.f32 %v4442_v20, %v4442_v20 }
 0x88f   :  { %2172 = vadd.xlane.f32.xlu0 %v2171_v39 }
 0x890   :  { %v4449_v24 = vsub.f32 %v2115_v33, %v2147_v21  ;;  %v2168_v52 = vsel %vm4837_vm10, %v2160_v36, 0.0 }
 0x891   :  { %v2134_v37 = vpop.xlane.xlu1 %2133  ;;  %2169 = vadd.xlane.f32.xlu1 %v2168_v52  ;;  %v2128_v38 = vpop.xlane.xlu0 %2127 }
 0x892   :  { %v2148_v6 = vmul.f32 0.03125, %v2134_v37  ;;  %v2146_v9 = vmul.f32 0.03125, %v2128_v38  ;;  %v2163_v55 = vmul.f32 %v4449_v24, %v4449_v24 }
 0x894   :  { %v4454_v10 = vsub.f32 %v2116_v13, %v2148_v6  ;;  %v4456_v49 = vsub.f32 %v2114_v63, %v2146_v9  ;;  %v2177_v44 = vsel %vm4838_vm11, %v2163_v55, 0.0 }
 0x895   :  { %2178 = vadd.xlane.f32.xlu0 %v2177_v44  ;;  %v2137_v45 = vpop.xlane.xlu0 %2136 }
 0x896   :  { %v2149_v40 = vmul.f32 0.03125, %v2137_v45  ;;  %v2162_v25 = vmul.f32 %v4456_v49, %v4456_v49  ;;  %v2164_v53 = vmul.f32 %v4454_v10, %v4454_v10 }
 0x898   :  { %v4461_v32 = vsub.f32 %v2117_v51, %v2149_v40  ;;  %v2174_v3 = vsel %vm4839_vm7, %v2162_v25, 0.0  ;;  %v2180_v5 = vsel %vm4840_vm8, %v2164_v53, 0.0 }
 0x899   :  { %2175 = vadd.xlane.f32.xlu1 %v2174_v3  ;;  %v2143_v42 = vpop.xlane.xlu0 %2142 }
 0x89a   :  { %v2151_v34 = vmul.f32 0.03125, %v2143_v42  ;;  %v2165_v4 = vmul.f32 %v4461_v32, %v4461_v32 }
 0x89b   :  { %v2140_v8 = vpop.xlane.xlu1 %2139 }
 0x89c   :  { %v4468_v28 = vsub.f32 %v2119_v43, %v2151_v34  ;;  %v2150_v1 = vmul.f32 0.03125, %v2140_v8  ;;  %v2183_v22 = vsel %vm4792_vm0, %v2165_v4, 0.0 }
 0x89d   :  { %2181 = vadd.xlane.f32.xlu1 %v2180_v5  ;;  %2184 = vadd.xlane.f32.xlu0 %v2183_v22 }
 0x89e   :  { %v4472_v29 = vsub.f32 %v2118_v7, %v2150_v1  ;;  %v2167_v19 = vmul.f32 %v4468_v28, %v4468_v28 }
 0x8a0   :  { %v2189_v41 = vsel %vm4841_vm1, %v2167_v19, 0.0  ;;  %v2166_v48 = vmul.f32 %v4472_v29, %v4472_v29 }
 0x8a1   :  { %2190 = vadd.xlane.f32.xlu0 %v2189_v41 }
 0x8a2   :  { %v2186_v61 = vsel %vm4842_vm6, %v2166_v48, 0.0 }
 0x8a3   :  { %2187 = vadd.xlane.f32.xlu1 %v2186_v61 }
 0x918   :  { %v2173_v33 = vpop.xlane.xlu0 %2172 }
 0x919   :  { %v2193_v46 = vmul.f32 0.03125, %v2173_v33 }
 0x91a   :  { %v2170_v58 = vpop.xlane.xlu1 %2169 }
 0x91b   :  { %v2201_v16 = vadd.f32 1e-05, %v2193_v46  ;;  %v2192_v56 = vmul.f32 0.03125, %v2170_v58 }
 0x91d   :  { %2979 = vrsqrt.f32 %v2201_v16  ;;  %v2200_v63 = vadd.f32 1e-05, %v2192_v56 }
 0x91e   :  { %v2179_v57 = vpop.xlane.xlu0 %2178 }
 0x91f   :  { %2981 = vrsqrt.f32 %v2200_v63  ;;  %v2195_v15 = vmul.f32 0.03125, %v2179_v57 }
 0x921   :  { %v2203_v11 = vadd.f32 1e-05, %v2195_v15 }
 0x922   :  { %v2176_v13 = vpop.xlane.xlu1 %2175 }
 0x923   :  { %2983 = vrsqrt.f32 %v2203_v11  ;;  %v2194_v51 = vmul.f32 0.03125, %v2176_v13 }
 0x925   :  { %v2202_v50 = vadd.f32 1e-05, %v2194_v51 }
 0x926   :  { %v2182_v26 = vpop.xlane.xlu1 %2181  ;;  %v2185_v0 = vpop.xlane.xlu0 %2184 }
 0x927   :  { %2985 = vrsqrt.f32 %v2202_v50  ;;  %v2196_v2 = vmul.f32 0.03125, %v2182_v26  ;;  %v2197_v43 = vmul.f32 0.03125, %v2185_v0 }
 0x929   :  { %v2204_v7 = vadd.f32 1e-05, %v2196_v2  ;;  %v2205_v59 = vadd.f32 1e-05, %v2197_v43 }
 0x92a   :  { %v2980_v54 = vpop.eup %2979  ;;  %v2191_v18 = vpop.xlane.xlu0 %2190 }
 0x92b   :  { %v2217_v23 = vmul.f32 %v2980_v54, %v4440_v12  ;;  %2987 = vrsqrt.f32 %v2204_v7  ;;  %v2199_v60 = vmul.f32 0.03125, %v2191_v18 }
 0x92c   :  { %v2982_v35 = vpop.eup %2981  ;;  %2989 = vrsqrt.f32 %v2205_v59  ;;  %v2188_v17 = vpop.xlane.xlu1 %2187 }
 0x92d   :  { %v2229_v21 = vmul.f32 %v2227_v30, %v2217_v23  ;;  %v2216_v62 = vmul.f32 %v2982_v35, %v4442_v20  ;;  %v2207_v39 = vadd.f32 1e-05, %v2199_v60  ;;  %v2198_v36 = vmul.f32 0.03125, %v2188_v17 }
 0x92f   :  { %v2241_v52 = vadd.f32 %v2239_v47, %v2229_v21  ;;  %v2228_v37 = vmul.f32 %v2227_v30, %v2216_v62  ;;  %2991 = vrsqrt.f32 %v2207_v39  ;;  %v2206_v38 = vadd.f32 1e-05, %v2198_v36 }
 0x930   :  { %v2984_v6 = vpop.eup %2983 }
 0x931   :  { %2249 = vst.msk [vmem:[#allocation8 + $0x8] sm:$0xff] %vm4843_vm14, %v2241_v52  ;;  %v2240_v31 = vadd.f32 %v2239_v47, %v2228_v37  ;;  %v2219_v12 = vmul.f32 %v2984_v6, %v4449_v24  ;;  %2993 = vrsqrt.f32 %v2206_v38 }
 0x933   :  { %2248 = vst.msk [vmem:[#allocation8] sm:$0xff] %vm4844_vm15, %v2240_v31  ;;  %v2231_v9 = vmul.f32 %v2227_v30, %v2219_v12 }
 0x934   :  { %v2986_v55 = vpop.eup %2985 }
 0x935   :  { %v2243_v44 = vadd.f32 %v2239_v47, %v2231_v9  ;;  %v2218_v20 = vmul.f32 %v2986_v55, %v4456_v49 }
 0x937   :  { %2251 = vst.msk [vmem:[#allocation8 + $0x18] sm:$0xff] %vm4845_vm2, %v2243_v44  ;;  %v2230_v45 = vmul.f32 %v2227_v30, %v2218_v20 }
 0x938   :  { %v2988_v40 = vpop.eup %2987 }
 0x939   :  { %v2990_v25 = vpop.eup %2989  ;;  %v2242_v3 = vadd.f32 %v2239_v47, %v2230_v45  ;;  %v2220_v53 = vmul.f32 %v2988_v40, %v4454_v10 }
 0x93a   :  { %v2221_v42 = vmul.f32 %v2990_v25, %v4461_v32 }
 0x93b   :  { %2250 = vst.msk [vmem:[#allocation8 + $0x10] sm:$0xff] %vm4846_vm9, %v2242_v3  ;;  %v2232_v24 = vmul.f32 %v2227_v30, %v2220_v53 }
 0x93c   :  { %v2992_v34 = vpop.eup %2991  ;;  %v2233_v4 = vmul.f32 %v2227_v30, %v2221_v42 }
 0x93d   :  { %v2244_v8 = vadd.f32 %v2239_v47, %v2232_v24  ;;  %v2223_v1 = vmul.f32 %v2992_v34, %v4468_v28 }
 0x93e   :  { %v2994_v5 = vpop.eup %2993  ;;  %v2245_v49 = vadd.f32 %v2239_v47, %v2233_v4 }
 0x93f   :  { %2252 = vst.msk [vmem:[#allocation8 + $0x20] sm:$0xff] %vm4847_vm12, %v2244_v8  ;;  %v2235_v22 = vmul.f32 %v2227_v30, %v2223_v1  ;;  %v2222_v19 = vmul.f32 %v2994_v5, %v4472_v29 }
 0x940   :  { %2253 = vst.msk [vmem:[#allocation8 + $0x28] sm:$0xff] %vm4848_vm3, %v2245_v49 }
 0x941   :  { %v2247_v10 = vadd.f32 %v2239_v47, %v2235_v22  ;;  %v2234_v32 = vmul.f32 %v2227_v30, %v2222_v19 }
 0x943   :  { %2255 = vst.msk [vmem:[#allocation8 + $0x38] sm:$0xff] %vm4849_vm5, %v2247_v10  ;;  %v2246_v41 = vadd.f32 %v2239_v47, %v2234_v32 }
 0x945   :  { %2254 = vst.msk [vmem:[#allocation8 + $0x30] sm:$0xff] %vm4850_vm13, %v2246_v41 }
 0x946   :  { %3075 = shalt.err (!%p3072_p5)
}
 0x947   :  { %2267 = dma.vmem_to_hbm [thread:$0]  %s2262_s5, 1024, %s4509_s3, [#allocation4], %s3094_s22, %s3094_s22, %s3095_s23  }
 0x948   :  { %3088 = dma.done.wait [#allocation4], 1024  }
 0x949   :  { %3089 = vsyncadd [#allocation4], 4294966272 }
 0x94a   :  { %2271 = vsyncpa [#allocation3], 1 }
 0x94b   :  { %2272 = vsyncpa [#allocation6], 1 }
 0x94c   :  { %2273 = vsyncpa [#allocation4], 1 }

</bundles_post_ra>
